<compile_context>
chip_gen: v6e
topology: v6e:2x2x1
jax: 0.10.0
libtpu: 0.0.40
codegen_flags: <defaults>
</compile_context>

<pallas_src>
import functools
import math

import jax
import jax.numpy as jnp
from jax.experimental import pallas as pl
from jax.experimental.pallas import tpu as pltpu

_VMEM_LIMIT = 64 * 1024 * 1024            # explicit scoped-VMEM budget
_DN_XWT = (((1,), (1,)), ((), ()))        # contract x[.., in] with torch-layout w[out, in]  (== x @ w.T)
_DN_ABT = (((1,), (1,)), ((), ()))        # a[q, d] . b[k, d]  ==  a @ b.T


def _round_up(x, m):
    return ((x + m - 1) // m) * m


def _row_tiling(m, target=256):
    """Row-tile size (multiple of 8, pipeline-friendly) and padded row count."""
    if m <= target:
        bm = max(8, _round_up(m, 8))
    else:
        bm = target
    return bm, _round_up(m, bm)


def _pad_rows(x, m_pad):
    m = x.shape[0]
    if m_pad == m:
        return x
    return jnp.pad(x, ((0, m_pad - m), (0, 0)))


def _gelu_tanh(x):
    # TODO(synk): the repo's 'gelu' is the exact erf form; tanh approximation used here for a
    # guaranteed Mosaic lowering. The in-script reference uses the same formula.
    return 0.5 * x * (1.0 + jnp.tanh(0.7978845608028654 * (x + 0.044715 * x * x * x)))


def _layernorm(x, gamma, beta, eps):
    mean = jnp.mean(x, axis=-1, keepdims=True)
    c = x - mean
    var = jnp.mean(c * c, axis=-1, keepdims=True)
    return c * jax.lax.rsqrt(var + eps) * gamma + beta


def _compiler_params(*semantics):
    return pltpu.CompilerParams(dimension_semantics=tuple(semantics),
                                vmem_limit_bytes=_VMEM_LIMIT)


# ------------------------------ kernels ------------------------------

def _attn_block_kernel(scale, eps, num_heads,
                       x_ref, wq_ref, bq_ref, wk_ref, bk_ref, wv_ref, bv_ref,
                       mask_ref, wo_ref, bo_ref, g_ref, be_ref, o_ref):
    """One batch element: QKV proj -> per-head softmax attention -> out dense + residual + LN."""
    xf = x_ref[...].astype(jnp.float32)                       # [S, H] (also the residual)
    xw = xf.astype(wq_ref.dtype)                              # MXU compute dtype (f32 default / bf16)
    q = jax.lax.dot_general(xw, wq_ref[...], _DN_XWT, preferred_element_type=jnp.float32) + bq_ref[...]
    k = jax.lax.dot_general(xw, wk_ref[...], _DN_XWT, preferred_element_type=jnp.float32) + bk_ref[...]
    v = jax.lax.dot_general(xw, wv_ref[...], _DN_XWT, preferred_element_type=jnp.float32) + bv_ref[...]

    h = q.shape[-1]
    dh = h // num_heads
    mask = mask_ref[...]                                      # [1, S] additive mask, broadcasts over rows

    ctx_parts = []
    for hd in range(num_heads):                               # static unroll over heads
        lo = hd * dh
        qh = q[:, lo:lo + dh]                                 # [S, dh]
        kh = k[:, lo:lo + dh]
        vh = v[:, lo:lo + dh]
        sc = jax.lax.dot_general(qh, kh, _DN_ABT,
                                 preferred_element_type=jnp.float32) * scale + mask   # [S, S]
        sc = sc - jnp.max(sc, axis=-1, keepdims=True)
        p = jnp.exp(sc)
        p = p / jnp.sum(p, axis=-1, keepdims=True)
        # TODO(synk): attention-prob dropout (training mode) omitted; eval semantics reproduced exactly.
        ctx_parts.append(jnp.dot(p, vh, preferred_element_type=jnp.float32))
    ctx = jnp.concatenate(ctx_parts, axis=-1)                 # [S, H]

    y = jax.lax.dot_general(ctx.astype(wo_ref.dtype), wo_ref[...], _DN_XWT,
                            preferred_element_type=jnp.float32) + bo_ref[...]
    # TODO(synk): hidden dropout (training mode) omitted; eval semantics reproduced exactly.
    y = y + xf
    o_ref[...] = _layernorm(y, g_ref[...], be_ref[...], eps).astype(o_ref.dtype)


def _ffn_kernel(eps, x_ref, wi_ref, bi_ref, wo_ref, bo_ref, g_ref, be_ref, o_ref):
    x = x_ref[...].astype(jnp.float32)     # attention output (also the residual)
    h = jax.lax.dot_general(x.astype(wi_ref.dtype), wi_ref[...], _DN_XWT,
                            preferred_element_type=jnp.float32) + bi_ref[...]
    h = _gelu_tanh(h)
    y = jax.lax.dot_general(h.astype(wo_ref.dtype), wo_ref[...], _DN_XWT,
                            preferred_element_type=jnp.float32) + bo_ref[...]
    # TODO(synk): hidden dropout (training mode) omitted; eval semantics reproduced exactly.
    y = y + x
    o_ref[...] = _layernorm(y, g_ref[...], be_ref[...], eps).astype(o_ref.dtype)


# ------------------------------ wrappers ------------------------------

def _attention_block(x3d, mask3d, params, num_heads, eps, compute_dtype):
    b, s, h = x3d.shape
    dh = h // num_heads
    full_w = pl.BlockSpec((h, h), lambda i: (0, 0))
    bias = pl.BlockSpec((1, h), lambda i: (0, 0))
    xspec = pl.BlockSpec((None, s, h), lambda i: (i, 0, 0))
    mspec = pl.BlockSpec((None, 1, s), lambda i: (i, 0, 0))
    return pl.pallas_call(
        functools.partial(_attn_block_kernel, 1.0 / math.sqrt(dh), eps, num_heads),
        out_shape=jax.ShapeDtypeStruct((b, s, h), jnp.float32),
        grid=(b,),
        in_specs=[xspec, full_w, bias, full_w, bias, full_w, bias, mspec,
                  full_w, bias, bias, bias],
        out_specs=xspec,
        compiler_params=_compiler_params("parallel"),
    )(x3d,
      params["q_w"].astype(compute_dtype), params["q_b"].reshape(1, h).astype(jnp.float32),
      params["k_w"].astype(compute_dtype), params["k_b"].reshape(1, h).astype(jnp.float32),
      params["v_w"].astype(compute_dtype), params["v_b"].reshape(1, h).astype(jnp.float32),
      mask3d,
      params["ao_w"].astype(compute_dtype), params["ao_b"].reshape(1, h).astype(jnp.float32),
      params["ao_ln_g"].reshape(1, h).astype(jnp.float32),
      params["ao_ln_b"].reshape(1, h).astype(jnp.float32))


def _ffn(x2d, wi, bi, wo, bo, gamma, beta, eps, compute_dtype):
    m, h = x2d.shape
    inter = wi.shape[0]
    bm, m_pad = _row_tiling(m)
    out = pl.pallas_call(
        functools.partial(_ffn_kernel, eps),
        out_shape=jax.ShapeDtypeStruct((m_pad, h), jnp.float32),
        grid=(m_pad // bm,),
        in_specs=[pl.BlockSpec((bm, h), lambda i: (i, 0)),
                  pl.BlockSpec((inter, h), lambda i: (0, 0)),
                  pl.BlockSpec((1, inter), lambda i: (0, 0)),
                  pl.BlockSpec((h, inter), lambda i: (0, 0)),
                  pl.BlockSpec((1, h), lambda i: (0, 0)),
                  pl.BlockSpec((1, h), lambda i: (0, 0)),
                  pl.BlockSpec((1, h), lambda i: (0, 0))],
        out_specs=pl.BlockSpec((bm, h), lambda i: (i, 0)),
        compiler_params=_compiler_params("parallel"),
    )(_pad_rows(x2d, m_pad), wi.astype(compute_dtype), bi.reshape(1, inter).astype(jnp.float32),
      wo.astype(compute_dtype), bo.reshape(1, h).astype(jnp.float32),
      gamma.reshape(1, h).astype(jnp.float32), beta.reshape(1, h).astype(jnp.float32))
    return out[:m]


def bert_layer_forward(hidden_states, attention_mask, params, *, num_heads,
                       eps=1e-12, compute_dtype=jnp.float32):
    """Eval-mode BertLayer forward. hidden_states: [B,S,H]; attention_mask: additive mask
    ([B,S] or [B,1,1,S]) or None. Weights are PyTorch nn.Linear [out,in] layout.
    Set compute_dtype=jnp.bfloat16 at real BERT shapes for MXU/bandwidth wins; f32 LN is kept."""
    b, s, h = hidden_states.shape
    x3d = hidden_states.astype(jnp.float32)

    if attention_mask is None:
        mask3d = jnp.zeros((b, 1, s), jnp.float32)
    else:
        mask3d = attention_mask.reshape(b, 1, s).astype(jnp.float32)

    # 1) fused attention block (Q/K/V proj + per-head softmax attention + out dense + residual + LN)
    attn_out = _attention_block(x3d, mask3d, params, num_heads, eps, compute_dtype)

    # 2) BertIntermediate + BertOutput fused: dense + GELU + dense + residual + LayerNorm
    layer_out = _ffn(attn_out.reshape(b * s, h), params["i_w"], params["i_b"],
                     params["o_w"], params["o_b"], params["o_ln_g"], params["o_ln_b"],
                     eps, compute_dtype)
    return layer_out.reshape(b, s, h)


if __name__ == "__main__":
    B, S, H, I, NH = 2, 8, 32, 64, 4       # hidden=32, intermediate=64, 4 heads (head_dim=8)
    EPS = 1e-12
    key = jax.random.PRNGKey(0)
    keys = jax.random.split(key, 16)

    hidden = jax.random.normal(keys[0], (B, S, H), jnp.float32)
    # additive attention mask (0 = keep, -10000 = masked); mask the last 2 keys of batch 1
    valid = jnp.ones((B, S), jnp.float32).at[1, -2:].set(0.0)
    attn_mask = (1.0 - valid) * -10000.0

    def lin(kw, kb, out_dim, in_dim):
        w = jax.random.normal(kw, (out_dim, in_dim), jnp.float32) * 0.02
        bb = jax.random.normal(kb, (out_dim,), jnp.float32) * 0.02
        return w, bb

    params = {}
    params["q_w"], params["q_b"] = lin(keys[1], keys[2], H, H)
    params["k_w"], params["k_b"] = lin(keys[3], keys[4], H, H)
    params["v_w"], params["v_b"] = lin(keys[5], keys[6], H, H)
    params["ao_w"], params["ao_b"] = lin(keys[7], keys[8], H, H)
    params["ao_ln_g"] = jnp.ones((H,), jnp.float32)
    params["ao_ln_b"] = jnp.zeros((H,), jnp.float32)
    params["i_w"], params["i_b"] = lin(keys[9], keys[10], I, H)
    params["o_w"], params["o_b"] = lin(keys[11], keys[12], H, I)
    params["o_ln_g"] = jnp.ones((H,), jnp.float32)
    params["o_ln_b"] = jnp.zeros((H,), jnp.float32)

    fwd = jax.jit(functools.partial(bert_layer_forward, params=params, num_heads=NH, eps=EPS))
    out = fwd(hidden, attn_mask)
    jax.block_until_ready(out)

    # ---- pure-JAX reference (same math as the PyTorch module, eval mode) ----
    def ln_ref(x, g, bta):
        mu = x.mean(-1, keepdims=True)
        var = ((x - mu) ** 2).mean(-1, keepdims=True)
        return (x - mu) / jnp.sqrt(var + EPS) * g + bta

    def linear(x, w, bb):
        return x @ w.T + bb

    dh = H // NH
    q = linear(hidden, params["q_w"], params["q_b"]).reshape(B, S, NH, dh).transpose(0, 2, 1, 3)
    k = linear(hidden, params["k_w"], params["k_b"]).reshape(B, S, NH, dh).transpose(0, 2, 1, 3)
    v = linear(hidden, params["v_w"], params["v_b"]).reshape(B, S, NH, dh).transpose(0, 2, 1, 3)
    scores = jnp.einsum("bhqd,bhkd->bhqk", q, k) / math.sqrt(dh) + attn_mask.reshape(B, 1, 1, S)
    probs = jax.nn.softmax(scores, axis=-1)
    ctx = jnp.einsum("bhqk,bhkd->bhqd", probs, v).transpose(0, 2, 1, 3).reshape(B, S, H)
    attn_out_ref = ln_ref(linear(ctx, params["ao_w"], params["ao_b"]) + hidden,
                          params["ao_ln_g"], params["ao_ln_b"])
    inter_ref = _gelu_tanh(linear(attn_out_ref, params["i_w"], params["i_b"]))
    ref = ln_ref(linear(inter_ref, params["o_w"], params["o_b"]) + attn_out_ref,
                 params["o_ln_g"], params["o_ln_b"])

    max_err = float(jnp.max(jnp.abs(out - ref)))
    assert jnp.allclose(out, ref, atol=5e-3, rtol=5e-3), f"mismatch vs reference, max abs err {max_err}"
    print("KERNEL_OK")
</pallas_src>

<mosaic_0001>
module attributes {stable_mosaic.version = 11 : i64} {
  func.func @_ffn_kernel(%arg0: i32, %arg1: memref<16x32xf32, #tpu.memory_space<vmem>>, %arg2: memref<64x32xf32, #tpu.memory_space<vmem>>, %arg3: memref<1x64xf32, #tpu.memory_space<vmem>>, %arg4: memref<32x64xf32, #tpu.memory_space<vmem>>, %arg5: memref<1x32xf32, #tpu.memory_space<vmem>>, %arg6: memref<1x32xf32, #tpu.memory_space<vmem>>, %arg7: memref<1x32xf32, #tpu.memory_space<vmem>>, %arg8: memref<16x32xf32, #tpu.memory_space<vmem>>) attributes {dimension_semantics = [#tpu.dimension_semantics<parallel>], iteration_bounds = array<i64: 1>, scalar_prefetch = 0 : i64, scratch_operands = 0 : i64, tpu.core_type = #tpu.core_type<tc>, window_params = [{transform_indices = @transform_0, window_bounds = array<i64: 16, 32>}, {pipeline_mode = #tpu.pipeline_mode<synchronous>, transform_indices = @transform_1, window_bounds = array<i64: 64, 32>}, {pipeline_mode = #tpu.pipeline_mode<synchronous>, transform_indices = @transform_2, window_bounds = array<i64: 1, 64>}, {pipeline_mode = #tpu.pipeline_mode<synchronous>, transform_indices = @transform_3, window_bounds = array<i64: 32, 64>}, {pipeline_mode = #tpu.pipeline_mode<synchronous>, transform_indices = @transform_4, window_bounds = array<i64: 1, 32>}, {pipeline_mode = #tpu.pipeline_mode<synchronous>, transform_indices = @transform_5, window_bounds = array<i64: 1, 32>}, {pipeline_mode = #tpu.pipeline_mode<synchronous>, transform_indices = @transform_6, window_bounds = array<i64: 1, 32>}, {transform_indices = @transform_7, window_bounds = array<i64: 16, 32>}]} {
    %c0 = arith.constant 0 : index
    %c0_0 = arith.constant 0 : index
    %0 = vector.load %arg1[%c0, %c0_0] : memref<16x32xf32, #tpu.memory_space<vmem>>, vector<16x32xf32>
    %c0_1 = arith.constant 0 : index
    %c0_2 = arith.constant 0 : index
    %1 = vector.load %arg2[%c0_1, %c0_2] : memref<64x32xf32, #tpu.memory_space<vmem>>, vector<64x32xf32>
    %cst = arith.constant dense<0.000000e+00> : vector<16x64xf32>
    %2 = tpu.matmul %0, %1, %cst {dimension_numbers = #tpu.dot_dimension_numbers<[1], [1], [0], [0], [0, 0, 1, 0], [], []>} : vector<16x32xf32>, vector<64x32xf32>, vector<16x64xf32> -> vector<16x64xf32>
    %c0_3 = arith.constant 0 : index
    %c0_4 = arith.constant 0 : index
    %3 = vector.load %arg3[%c0_3, %c0_4] : memref<1x64xf32, #tpu.memory_space<vmem>>, vector<1x64xf32>
    %4 = vector.broadcast %3 : vector<1x64xf32> to vector<16x64xf32>
    %5 = arith.addf %2, %4 : vector<16x64xf32>
    %cst_5 = arith.constant 5.000000e-01 : f32
    %6 = vector.broadcast %cst_5 : f32 to vector<16x64xf32>
    %7 = arith.mulf %6, %5 : vector<16x64xf32>
    %cst_6 = arith.constant 4.471500e-02 : f32
    %8 = vector.broadcast %cst_6 : f32 to vector<16x64xf32>
    %9 = arith.mulf %8, %5 : vector<16x64xf32>
    %10 = arith.mulf %9, %5 : vector<16x64xf32>
    %11 = arith.mulf %10, %5 : vector<16x64xf32>
    %12 = arith.addf %5, %11 : vector<16x64xf32>
    %cst_7 = arith.constant 0.797884583 : f32
    %13 = vector.broadcast %cst_7 : f32 to vector<16x64xf32>
    %14 = arith.mulf %13, %12 : vector<16x64xf32>
    %15 = math.tanh %14 : vector<16x64xf32>
    %cst_8 = arith.constant 1.000000e+00 : f32
    %16 = vector.broadcast %cst_8 : f32 to vector<16x64xf32>
    %17 = arith.addf %16, %15 : vector<16x64xf32>
    %18 = arith.mulf %7, %17 : vector<16x64xf32>
    %c0_9 = arith.constant 0 : index
    %c0_10 = arith.constant 0 : index
    %19 = vector.load %arg4[%c0_9, %c0_10] : memref<32x64xf32, #tpu.memory_space<vmem>>, vector<32x64xf32>
    %cst_11 = arith.constant dense<0.000000e+00> : vector<16x32xf32>
    %20 = tpu.matmul %18, %19, %cst_11 {dimension_numbers = #tpu.dot_dimension_numbers<[1], [1], [0], [0], [0, 0, 1, 0], [], []>} : vector<16x64xf32>, vector<32x64xf32>, vector<16x32xf32> -> vector<16x32xf32>
    %c0_12 = arith.constant 0 : index
    %c0_13 = arith.constant 0 : index
    %21 = vector.load %arg5[%c0_12, %c0_13] : memref<1x32xf32, #tpu.memory_space<vmem>>, vector<1x32xf32>
    %22 = vector.broadcast %21 : vector<1x32xf32> to vector<16x32xf32>
    %23 = arith.addf %20, %22 : vector<16x32xf32>
    %24 = arith.addf %23, %0 : vector<16x32xf32>
    %c0_14 = arith.constant 0 : index
    %c0_15 = arith.constant 0 : index
    %25 = vector.load %arg6[%c0_14, %c0_15] : memref<1x32xf32, #tpu.memory_space<vmem>>, vector<1x32xf32>
    %c0_16 = arith.constant 0 : index
    %c0_17 = arith.constant 0 : index
    %26 = vector.load %arg7[%c0_16, %c0_17] : memref<1x32xf32, #tpu.memory_space<vmem>>, vector<1x32xf32>
    %cst_18 = arith.constant dense<0.000000e+00> : vector<16xf32>
    %27 = vector.multi_reduction <add>, %24, %cst_18 [1] : vector<16x32xf32> to vector<16xf32>
    %28 = vector.shape_cast %27 : vector<16xf32> to vector<16x1xf32>
    %cst_19 = arith.constant 3.200000e+01 : f32
    %29 = vector.broadcast %cst_19 : f32 to vector<16x1xf32>
    %30 = arith.divf %28, %29 : vector<16x1xf32>
    %31 = vector.broadcast %30 : vector<16x1xf32> to vector<16x32xf32>
    %32 = arith.subf %24, %31 : vector<16x32xf32>
    %33 = arith.mulf %32, %32 : vector<16x32xf32>
    %cst_20 = arith.constant dense<0.000000e+00> : vector<16xf32>
    %34 = vector.multi_reduction <add>, %33, %cst_20 [1] : vector<16x32xf32> to vector<16xf32>
    %35 = vector.shape_cast %34 : vector<16xf32> to vector<16x1xf32>
    %cst_21 = arith.constant 3.200000e+01 : f32
    %36 = vector.broadcast %cst_21 : f32 to vector<16x1xf32>
    %37 = arith.divf %35, %36 : vector<16x1xf32>
    %cst_22 = arith.constant 9.99999996E-13 : f32
    %38 = vector.broadcast %cst_22 : f32 to vector<16x1xf32>
    %39 = arith.addf %37, %38 : vector<16x1xf32>
    %40 = math.rsqrt %39 : vector<16x1xf32>
    %41 = vector.broadcast %40 : vector<16x1xf32> to vector<16x32xf32>
    %42 = arith.mulf %32, %41 : vector<16x32xf32>
    %43 = vector.broadcast %25 : vector<1x32xf32> to vector<16x32xf32>
    %44 = arith.mulf %42, %43 : vector<16x32xf32>
    %45 = vector.broadcast %26 : vector<1x32xf32> to vector<16x32xf32>
    %46 = arith.addf %44, %45 : vector<16x32xf32>
    %c0_23 = arith.constant 0 : index
    %c0_24 = arith.constant 0 : index
    %47 = vector.load %arg8[%c0_23, %c0_24] : memref<16x32xf32, #tpu.memory_space<vmem>>, vector<16x32xf32>
    tpu.vector_store %arg8[%c0_23, %c0_24], %46 {strides = array<i32>} : memref<16x32xf32, #tpu.memory_space<vmem>>, vector<16x32xf32>,
    return
  }
  func.func @transform_0(%arg0: i32) -> (i32, i32) {
    %c0_i32 = arith.constant 0 : i32
    %c0_i32_0 = arith.constant 0 : i32
    return %arg0, %c0_i32 : i32, i32
  }
  func.func @transform_1(%arg0: i32) -> (i32, i32) {
    %c0_i32 = arith.constant 0 : i32
    %c0_i32_0 = arith.constant 0 : i32
    %c0_i32_1 = arith.constant 0 : i32
    return %c0_i32, %c0_i32_0 : i32, i32
  }
  func.func @transform_2(%arg0: i32) -> (i32, i32) {
    %c0_i32 = arith.constant 0 : i32
    %c0_i32_0 = arith.constant 0 : i32
    %c0_i32_1 = arith.constant 0 : i32
    return %c0_i32, %c0_i32_0 : i32, i32
  }
  func.func @transform_3(%arg0: i32) -> (i32, i32) {
    %c0_i32 = arith.constant 0 : i32
    %c0_i32_0 = arith.constant 0 : i32
    %c0_i32_1 = arith.constant 0 : i32
    return %c0_i32, %c0_i32_0 : i32, i32
  }
  func.func @transform_4(%arg0: i32) -> (i32, i32) {
    %c0_i32 = arith.constant 0 : i32
    %c0_i32_0 = arith.constant 0 : i32
    %c0_i32_1 = arith.constant 0 : i32
    return %c0_i32, %c0_i32_0 : i32, i32
  }
  func.func @transform_5(%arg0: i32) -> (i32, i32) {
    %c0_i32 = arith.constant 0 : i32
    %c0_i32_0 = arith.constant 0 : i32
    %c0_i32_1 = arith.constant 0 : i32
    return %c0_i32, %c0_i32_0 : i32, i32
  }
  func.func @transform_6(%arg0: i32) -> (i32, i32) {
    %c0_i32 = arith.constant 0 : i32
    %c0_i32_0 = arith.constant 0 : i32
    %c0_i32_1 = arith.constant 0 : i32
    return %c0_i32, %c0_i32_0 : i32, i32
  }
  func.func @transform_7(%arg0: i32) -> (i32, i32) {
    %c0_i32 = arith.constant 0 : i32
    %c0_i32_0 = arith.constant 0 : i32
    return %arg0, %c0_i32 : i32, i32
  }
}

module attributes {stable_mosaic.version = 11 : i64} {
  func.func @_attn_block_kernel(%arg0: i32, %arg1: memref<1x8x32xf32, #tpu.memory_space<vmem>>, %arg2: memref<32x32xf32, #tpu.memory_space<vmem>>, %arg3: memref<1x32xf32, #tpu.memory_space<vmem>>, %arg4: memref<32x32xf32, #tpu.memory_space<vmem>>, %arg5: memref<1x32xf32, #tpu.memory_space<vmem>>, %arg6: memref<32x32xf32, #tpu.memory_space<vmem>>, %arg7: memref<1x32xf32, #tpu.memory_space<vmem>>, %arg8: memref<1x1x8xf32, #tpu.memory_space<vmem>>, %arg9: memref<32x32xf32, #tpu.memory_space<vmem>>, %arg10: memref<1x32xf32, #tpu.memory_space<vmem>>, %arg11: memref<1x32xf32, #tpu.memory_space<vmem>>, %arg12: memref<1x32xf32, #tpu.memory_space<vmem>>, %arg13: memref<1x8x32xf32, #tpu.memory_space<vmem>>) attributes {dimension_semantics = [#tpu.dimension_semantics<parallel>], iteration_bounds = array<i64: 2>, scalar_prefetch = 0 : i64, scratch_operands = 0 : i64, tpu.core_type = #tpu.core_type<tc>, window_params = [{transform_indices = @transform_0, window_bounds = array<i64: 1, 8, 32>}, {pipeline_mode = #tpu.pipeline_mode<synchronous>, transform_indices = @transform_1, window_bounds = array<i64: 32, 32>}, {pipeline_mode = #tpu.pipeline_mode<synchronous>, transform_indices = @transform_2, window_bounds = array<i64: 1, 32>}, {pipeline_mode = #tpu.pipeline_mode<synchronous>, transform_indices = @transform_3, window_bounds = array<i64: 32, 32>}, {pipeline_mode = #tpu.pipeline_mode<synchronous>, transform_indices = @transform_4, window_bounds = array<i64: 1, 32>}, {pipeline_mode = #tpu.pipeline_mode<synchronous>, transform_indices = @transform_5, window_bounds = array<i64: 32, 32>}, {pipeline_mode = #tpu.pipeline_mode<synchronous>, transform_indices = @transform_6, window_bounds = array<i64: 1, 32>}, {transform_indices = @transform_7, window_bounds = array<i64: 1, 1, 8>}, {pipeline_mode = #tpu.pipeline_mode<synchronous>, transform_indices = @transform_8, window_bounds = array<i64: 32, 32>}, {pipeline_mode = #tpu.pipeline_mode<synchronous>, transform_indices = @transform_9, window_bounds = array<i64: 1, 32>}, {pipeline_mode = #tpu.pipeline_mode<synchronous>, transform_indices = @transform_10, window_bounds = array<i64: 1, 32>}, {pipeline_mode = #tpu.pipeline_mode<synchronous>, transform_indices = @transform_11, window_bounds = array<i64: 1, 32>}, {transform_indices = @transform_12, window_bounds = array<i64: 1, 8, 32>}]} {
    %c0 = arith.constant 0 : index
    %c0_0 = arith.constant 0 : index
    %c0_1 = arith.constant 0 : index
    %0 = vector.load %arg1[%c0, %c0_0, %c0_1] : memref<1x8x32xf32, #tpu.memory_space<vmem>>, vector<1x8x32xf32>
    %1 = vector.shape_cast %0 : vector<1x8x32xf32> to vector<8x32xf32>
    %c0_2 = arith.constant 0 : index
    %c0_3 = arith.constant 0 : index
    %2 = vector.load %arg2[%c0_2, %c0_3] : memref<32x32xf32, #tpu.memory_space<vmem>>, vector<32x32xf32>
    %cst = arith.constant dense<0.000000e+00> : vector<8x32xf32>
    %3 = tpu.matmul %1, %2, %cst {dimension_numbers = #tpu.dot_dimension_numbers<[1], [1], [0], [0], [0, 0, 1, 0], [], []>} : vector<8x32xf32>, vector<32x32xf32>, vector<8x32xf32> -> vector<8x32xf32>
    %c0_4 = arith.constant 0 : index
    %c0_5 = arith.constant 0 : index
    %4 = vector.load %arg3[%c0_4, %c0_5] : memref<1x32xf32, #tpu.memory_space<vmem>>, vector<1x32xf32>
    %5 = vector.broadcast %4 : vector<1x32xf32> to vector<8x32xf32>
    %6 = arith.addf %3, %5 : vector<8x32xf32>
    %c0_6 = arith.constant 0 : index
    %c0_7 = arith.constant 0 : index
    %7 = vector.load %arg4[%c0_6, %c0_7] : memref<32x32xf32, #tpu.memory_space<vmem>>, vector<32x32xf32>
    %cst_8 = arith.constant dense<0.000000e+00> : vector<8x32xf32>
    %8 = tpu.matmul %1, %7, %cst_8 {dimension_numbers = #tpu.dot_dimension_numbers<[1], [1], [0], [0], [0, 0, 1, 0], [], []>} : vector<8x32xf32>, vector<32x32xf32>, vector<8x32xf32> -> vector<8x32xf32>
    %c0_9 = arith.constant 0 : index
    %c0_10 = arith.constant 0 : index
    %9 = vector.load %arg5[%c0_9, %c0_10] : memref<1x32xf32, #tpu.memory_space<vmem>>, vector<1x32xf32>
    %10 = vector.broadcast %9 : vector<1x32xf32> to vector<8x32xf32>
    %11 = arith.addf %8, %10 : vector<8x32xf32>
    %c0_11 = arith.constant 0 : index
    %c0_12 = arith.constant 0 : index
    %12 = vector.load %arg6[%c0_11, %c0_12] : memref<32x32xf32, #tpu.memory_space<vmem>>, vector<32x32xf32>
    %cst_13 = arith.constant dense<0.000000e+00> : vector<8x32xf32>
    %13 = tpu.matmul %1, %12, %cst_13 {dimension_numbers = #tpu.dot_dimension_numbers<[1], [1], [0], [0], [0, 0, 1, 0], [], []>} : vector<8x32xf32>, vector<32x32xf32>, vector<8x32xf32> -> vector<8x32xf32>
    %c0_14 = arith.constant 0 : index
    %c0_15 = arith.constant 0 : index
    %14 = vector.load %arg7[%c0_14, %c0_15] : memref<1x32xf32, #tpu.memory_space<vmem>>, vector<1x32xf32>
    %15 = vector.broadcast %14 : vector<1x32xf32> to vector<8x32xf32>
    %16 = arith.addf %13, %15 : vector<8x32xf32>
    %c0_16 = arith.constant 0 : index
    %c0_17 = arith.constant 0 : index
    %c0_18 = arith.constant 0 : index
    %17 = vector.load %arg8[%c0_16, %c0_17, %c0_18] : memref<1x1x8xf32, #tpu.memory_space<vmem>>, vector<1x1x8xf32>
    %18 = vector.shape_cast %17 : vector<1x1x8xf32> to vector<1x8xf32>
    %19 = vector.extract_strided_slice %6 {offsets = [0, 0], sizes = [8, 8], strides = [1, 1]} : vector<8x32xf32> to vector<8x8xf32>
    %20 = vector.extract_strided_slice %11 {offsets = [0, 0], sizes = [8, 8], strides = [1, 1]} : vector<8x32xf32> to vector<8x8xf32>
    %21 = vector.extract_strided_slice %16 {offsets = [0, 0], sizes = [8, 8], strides = [1, 1]} : vector<8x32xf32> to vector<8x8xf32>
    %cst_19 = arith.constant dense<0.000000e+00> : vector<8x8xf32>
    %22 = tpu.matmul %19, %20, %cst_19 {dimension_numbers = #tpu.dot_dimension_numbers<[1], [1], [0], [0], [0, 0, 1, 0], [], []>} : vector<8x8xf32>, vector<8x8xf32>, vector<8x8xf32> -> vector<8x8xf32>
    %cst_20 = arith.constant 0.353553385 : f32
    %23 = vector.broadcast %cst_20 : f32 to vector<8x8xf32>
    %24 = arith.mulf %22, %23 : vector<8x8xf32>
    %25 = vector.broadcast %18 : vector<1x8xf32> to vector<8x8xf32>
    %26 = arith.addf %24, %25 : vector<8x8xf32>
    %cst_21 = arith.constant dense<0xFF800000> : vector<8xf32>
    %27 = vector.multi_reduction <maximumf>, %26, %cst_21 [1] : vector<8x8xf32> to vector<8xf32>
    %28 = vector.shape_cast %27 : vector<8xf32> to vector<8x1xf32>
    %29 = vector.broadcast %28 : vector<8x1xf32> to vector<8x8xf32>
    %30 = arith.subf %26, %29 : vector<8x8xf32>
    %31 = math.exp %30 : vector<8x8xf32>
    %cst_22 = arith.constant dense<0.000000e+00> : vector<8xf32>
    %32 = vector.multi_reduction <add>, %31, %cst_22 [1] : vector<8x8xf32> to vector<8xf32>
    %33 = vector.shape_cast %32 : vector<8xf32> to vector<8x1xf32>
    %34 = vector.broadcast %33 : vector<8x1xf32> to vector<8x8xf32>
    %35 = arith.divf %31, %34 : vector<8x8xf32>
    %cst_23 = arith.constant dense<0.000000e+00> : vector<8x8xf32>
    %36 = tpu.matmul %35, %21, %cst_23 {dimension_numbers = #tpu.dot_dimension_numbers<[1], [0], [0], [1], [0, 0, 1, 1], [], []>} : vector<8x8xf32>, vector<8x8xf32>, vector<8x8xf32> -> vector<8x8xf32>
    %37 = vector.extract_strided_slice %6 {offsets = [0, 8], sizes = [8, 8], strides = [1, 1]} : vector<8x32xf32> to vector<8x8xf32>
    %38 = vector.extract_strided_slice %11 {offsets = [0, 8], sizes = [8, 8], strides = [1, 1]} : vector<8x32xf32> to vector<8x8xf32>
    %39 = vector.extract_strided_slice %16 {offsets = [0, 8], sizes = [8, 8], strides = [1, 1]} : vector<8x32xf32> to vector<8x8xf32>
    %cst_24 = arith.constant dense<0.000000e+00> : vector<8x8xf32>
    %40 = tpu.matmul %37, %38, %cst_24 {dimension_numbers = #tpu.dot_dimension_numbers<[1], [1], [0], [0], [0, 0, 1, 0], [], []>} : vector<8x8xf32>, vector<8x8xf32>, vector<8x8xf32> -> vector<8x8xf32>
    %cst_25 = arith.constant 0.353553385 : f32
    %41 = vector.broadcast %cst_25 : f32 to vector<8x8xf32>
    %42 = arith.mulf %40, %41 : vector<8x8xf32>
    %43 = vector.broadcast %18 : vector<1x8xf32> to vector<8x8xf32>
    %44 = arith.addf %42, %43 : vector<8x8xf32>
    %cst_26 = arith.constant dense<0xFF800000> : vector<8xf32>
    %45 = vector.multi_reduction <maximumf>, %44, %cst_26 [1] : vector<8x8xf32> to vector<8xf32>
    %46 = vector.shape_cast %45 : vector<8xf32> to vector<8x1xf32>
    %47 = vector.broadcast %46 : vector<8x1xf32> to vector<8x8xf32>
    %48 = arith.subf %44, %47 : vector<8x8xf32>
    %49 = math.exp %48 : vector<8x8xf32>
    %cst_27 = arith.constant dense<0.000000e+00> : vector<8xf32>
    %50 = vector.multi_reduction <add>, %49, %cst_27 [1] : vector<8x8xf32> to vector<8xf32>
    %51 = vector.shape_cast %50 : vector<8xf32> to vector<8x1xf32>
    %52 = vector.broadcast %51 : vector<8x1xf32> to vector<8x8xf32>
    %53 = arith.divf %49, %52 : vector<8x8xf32>
    %cst_28 = arith.constant dense<0.000000e+00> : vector<8x8xf32>
    %54 = tpu.matmul %53, %39, %cst_28 {dimension_numbers = #tpu.dot_dimension_numbers<[1], [0], [0], [1], [0, 0, 1, 1], [], []>} : vector<8x8xf32>, vector<8x8xf32>, vector<8x8xf32> -> vector<8x8xf32>
    %55 = vector.extract_strided_slice %6 {offsets = [0, 16], sizes = [8, 8], strides = [1, 1]} : vector<8x32xf32> to vector<8x8xf32>
    %56 = vector.extract_strided_slice %11 {offsets = [0, 16], sizes = [8, 8], strides = [1, 1]} : vector<8x32xf32> to vector<8x8xf32>
    %57 = vector.extract_strided_slice %16 {offsets = [0, 16], sizes = [8, 8], strides = [1, 1]} : vector<8x32xf32> to vector<8x8xf32>
    %cst_29 = arith.constant dense<0.000000e+00> : vector<8x8xf32>
    %58 = tpu.matmul %55, %56, %cst_29 {dimension_numbers = #tpu.dot_dimension_numbers<[1], [1], [0], [0], [0, 0, 1, 0], [], []>} : vector<8x8xf32>, vector<8x8xf32>, vector<8x8xf32> -> vector<8x8xf32>
    %cst_30 = arith.constant 0.353553385 : f32
    %59 = vector.broadcast %cst_30 : f32 to vector<8x8xf32>
    %60 = arith.mulf %58, %59 : vector<8x8xf32>
    %61 = vector.broadcast %18 : vector<1x8xf32> to vector<8x8xf32>
    %62 = arith.addf %60, %61 : vector<8x8xf32>
    %cst_31 = arith.constant dense<0xFF800000> : vector<8xf32>
    %63 = vector.multi_reduction <maximumf>, %62, %cst_31 [1] : vector<8x8xf32> to vector<8xf32>
    %64 = vector.shape_cast %63 : vector<8xf32> to vector<8x1xf32>
    %65 = vector.broadcast %64 : vector<8x1xf32> to vector<8x8xf32>
    %66 = arith.subf %62, %65 : vector<8x8xf32>
    %67 = math.exp %66 : vector<8x8xf32>
    %cst_32 = arith.constant dense<0.000000e+00> : vector<8xf32>
    %68 = vector.multi_reduction <add>, %67, %cst_32 [1] : vector<8x8xf32> to vector<8xf32>
    %69 = vector.shape_cast %68 : vector<8xf32> to vector<8x1xf32>
    %70 = vector.broadcast %69 : vector<8x1xf32> to vector<8x8xf32>
    %71 = arith.divf %67, %70 : vector<8x8xf32>
    %cst_33 = arith.constant dense<0.000000e+00> : vector<8x8xf32>
    %72 = tpu.matmul %71, %57, %cst_33 {dimension_numbers = #tpu.dot_dimension_numbers<[1], [0], [0], [1], [0, 0, 1, 1], [], []>} : vector<8x8xf32>, vector<8x8xf32>, vector<8x8xf32> -> vector<8x8xf32>
    %73 = vector.extract_strided_slice %6 {offsets = [0, 24], sizes = [8, 8], strides = [1, 1]} : vector<8x32xf32> to vector<8x8xf32>
    %74 = vector.extract_strided_slice %11 {offsets = [0, 24], sizes = [8, 8], strides = [1, 1]} : vector<8x32xf32> to vector<8x8xf32>
    %75 = vector.extract_strided_slice %16 {offsets = [0, 24], sizes = [8, 8], strides = [1, 1]} : vector<8x32xf32> to vector<8x8xf32>
    %cst_34 = arith.constant dense<0.000000e+00> : vector<8x8xf32>
    %76 = tpu.matmul %73, %74, %cst_34 {dimension_numbers = #tpu.dot_dimension_numbers<[1], [1], [0], [0], [0, 0, 1, 0], [], []>} : vector<8x8xf32>, vector<8x8xf32>, vector<8x8xf32> -> vector<8x8xf32>
    %cst_35 = arith.constant 0.353553385 : f32
    %77 = vector.broadcast %cst_35 : f32 to vector<8x8xf32>
    %78 = arith.mulf %76, %77 : vector<8x8xf32>
    %79 = vector.broadcast %18 : vector<1x8xf32> to vector<8x8xf32>
    %80 = arith.addf %78, %79 : vector<8x8xf32>
    %cst_36 = arith.constant dense<0xFF800000> : vector<8xf32>
    %81 = vector.multi_reduction <maximumf>, %80, %cst_36 [1] : vector<8x8xf32> to vector<8xf32>
    %82 = vector.shape_cast %81 : vector<8xf32> to vector<8x1xf32>
    %83 = vector.broadcast %82 : vector<8x1xf32> to vector<8x8xf32>
    %84 = arith.subf %80, %83 : vector<8x8xf32>
    %85 = math.exp %84 : vector<8x8xf32>
    %cst_37 = arith.constant dense<0.000000e+00> : vector<8xf32>
    %86 = vector.multi_reduction <add>, %85, %cst_37 [1] : vector<8x8xf32> to vector<8xf32>
    %87 = vector.shape_cast %86 : vector<8xf32> to vector<8x1xf32>
    %88 = vector.broadcast %87 : vector<8x1xf32> to vector<8x8xf32>
    %89 = arith.divf %85, %88 : vector<8x8xf32>
    %cst_38 = arith.constant dense<0.000000e+00> : vector<8x8xf32>
    %90 = tpu.matmul %89, %75, %cst_38 {dimension_numbers = #tpu.dot_dimension_numbers<[1], [0], [0], [1], [0, 0, 1, 1], [], []>} : vector<8x8xf32>, vector<8x8xf32>, vector<8x8xf32> -> vector<8x8xf32>
    %91 = tpu.concatenate %36, %54, %72, %90 in 1 : vector<8x8xf32>, vector<8x8xf32>, vector<8x8xf32>, vector<8x8xf32> -> vector<8x32xf32>
    %c0_39 = arith.constant 0 : index
    %c0_40 = arith.constant 0 : index
    %92 = vector.load %arg9[%c0_39, %c0_40] : memref<32x32xf32, #tpu.memory_space<vmem>>, vector<32x32xf32>
    %cst_41 = arith.constant dense<0.000000e+00> : vector<8x32xf32>
    %93 = tpu.matmul %91, %92, %cst_41 {dimension_numbers = #tpu.dot_dimension_numbers<[1], [1], [0], [0], [0, 0, 1, 0], [], []>} : vector<8x32xf32>, vector<32x32xf32>, vector<8x32xf32> -> vector<8x32xf32>
    %c0_42 = arith.constant 0 : index
    %c0_43 = arith.constant 0 : index
    %94 = vector.load %arg10[%c0_42, %c0_43] : memref<1x32xf32, #tpu.memory_space<vmem>>, vector<1x32xf32>
    %95 = vector.broadcast %94 : vector<1x32xf32> to vector<8x32xf32>
    %96 = arith.addf %93, %95 : vector<8x32xf32>
    %97 = arith.addf %96, %1 : vector<8x32xf32>
    %c0_44 = arith.constant 0 : index
    %c0_45 = arith.constant 0 : index
    %98 = vector.load %arg11[%c0_44, %c0_45] : memref<1x32xf32, #tpu.memory_space<vmem>>, vector<1x32xf32>
    %c0_46 = arith.constant 0 : index
    %c0_47 = arith.constant 0 : index
    %99 = vector.load %arg12[%c0_46, %c0_47] : memref<1x32xf32, #tpu.memory_space<vmem>>, vector<1x32xf32>
    %cst_48 = arith.constant dense<0.000000e+00> : vector<8xf32>
    %100 = vector.multi_reduction <add>, %97, %cst_48 [1] : vector<8x32xf32> to vector<8xf32>
    %101 = vector.shape_cast %100 : vector<8xf32> to vector<8x1xf32>
    %cst_49 = arith.constant 3.200000e+01 : f32
    %102 = vector.broadcast %cst_49 : f32 to vector<8x1xf32>
    %103 = arith.divf %101, %102 : vector<8x1xf32>
    %104 = vector.broadcast %103 : vector<8x1xf32> to vector<8x32xf32>
    %105 = arith.subf %97, %104 : vector<8x32xf32>
    %106 = arith.mulf %105, %105 : vector<8x32xf32>
    %cst_50 = arith.constant dense<0.000000e+00> : vector<8xf32>
    %107 = vector.multi_reduction <add>, %106, %cst_50 [1] : vector<8x32xf32> to vector<8xf32>
    %108 = vector.shape_cast %107 : vector<8xf32> to vector<8x1xf32>
    %cst_51 = arith.constant 3.200000e+01 : f32
    %109 = vector.broadcast %cst_51 : f32 to vector<8x1xf32>
    %110 = arith.divf %108, %109 : vector<8x1xf32>
    %cst_52 = arith.constant 9.99999996E-13 : f32
    %111 = vector.broadcast %cst_52 : f32 to vector<8x1xf32>
    %112 = arith.addf %110, %111 : vector<8x1xf32>
    %113 = math.rsqrt %112 : vector<8x1xf32>
    %114 = vector.broadcast %113 : vector<8x1xf32> to vector<8x32xf32>
    %115 = arith.mulf %105, %114 : vector<8x32xf32>
    %116 = vector.broadcast %98 : vector<1x32xf32> to vector<8x32xf32>
    %117 = arith.mulf %115, %116 : vector<8x32xf32>
    %118 = vector.broadcast %99 : vector<1x32xf32> to vector<8x32xf32>
    %119 = arith.addf %117, %118 : vector<8x32xf32>
    %c0_53 = arith.constant 0 : index
    %c0_54 = arith.constant 0 : index
    %c0_55 = arith.constant 0 : index
    %120 = vector.load %arg13[%c0_53, %c0_54, %c0_55] : memref<1x8x32xf32, #tpu.memory_space<vmem>>, vector<1x8x32xf32>
    %121 = vector.shape_cast %120 : vector<1x8x32xf32> to vector<8x32xf32>
    %122 = vector.shape_cast %119 : vector<8x32xf32> to vector<1x8x32xf32>
    tpu.vector_store %arg13[%c0_53, %c0_54, %c0_55], %122 {strides = array<i32>} : memref<1x8x32xf32, #tpu.memory_space<vmem>>, vector<1x8x32xf32>,
    return
  }
  func.func @transform_0(%arg0: i32) -> (i32, i32, i32) {
    %c0_i32 = arith.constant 0 : i32
    %c0_i32_0 = arith.constant 0 : i32
    %c0_i32_1 = arith.constant 0 : i32
    return %arg0, %c0_i32, %c0_i32_0 : i32, i32, i32
  }
  func.func @transform_1(%arg0: i32) -> (i32, i32) {
    %c0_i32 = arith.constant 0 : i32
    %c0_i32_0 = arith.constant 0 : i32
    %c0_i32_1 = arith.constant 0 : i32
    return %c0_i32, %c0_i32_0 : i32, i32
  }
  func.func @transform_2(%arg0: i32) -> (i32, i32) {
    %c0_i32 = arith.constant 0 : i32
    %c0_i32_0 = arith.constant 0 : i32
    %c0_i32_1 = arith.constant 0 : i32
    return %c0_i32, %c0_i32_0 : i32, i32
  }
  func.func @transform_3(%arg0: i32) -> (i32, i32) {
    %c0_i32 = arith.constant 0 : i32
    %c0_i32_0 = arith.constant 0 : i32
    %c0_i32_1 = arith.constant 0 : i32
    return %c0_i32, %c0_i32_0 : i32, i32
  }
  func.func @transform_4(%arg0: i32) -> (i32, i32) {
    %c0_i32 = arith.constant 0 : i32
    %c0_i32_0 = arith.constant 0 : i32
    %c0_i32_1 = arith.constant 0 : i32
    return %c0_i32, %c0_i32_0 : i32, i32
  }
  func.func @transform_5(%arg0: i32) -> (i32, i32) {
    %c0_i32 = arith.constant 0 : i32
    %c0_i32_0 = arith.constant 0 : i32
    %c0_i32_1 = arith.constant 0 : i32
    return %c0_i32, %c0_i32_0 : i32, i32
  }
  func.func @transform_6(%arg0: i32) -> (i32, i32) {
    %c0_i32 = arith.constant 0 : i32
    %c0_i32_0 = arith.constant 0 : i32
    %c0_i32_1 = arith.constant 0 : i32
    return %c0_i32, %c0_i32_0 : i32, i32
  }
  func.func @transform_7(%arg0: i32) -> (i32, i32, i32) {
    %c0_i32 = arith.constant 0 : i32
    %c0_i32_0 = arith.constant 0 : i32
    %c0_i32_1 = arith.constant 0 : i32
    return %arg0, %c0_i32, %c0_i32_0 : i32, i32, i32
  }
  func.func @transform_8(%arg0: i32) -> (i32, i32) {
    %c0_i32 = arith.constant 0 : i32
    %c0_i32_0 = arith.constant 0 : i32
    %c0_i32_1 = arith.constant 0 : i32
    return %c0_i32, %c0_i32_0 : i32, i32
  }
  func.func @transform_9(%arg0: i32) -> (i32, i32) {
    %c0_i32 = arith.constant 0 : i32
    %c0_i32_0 = arith.constant 0 : i32
    %c0_i32_1 = arith.constant 0 : i32
    return %c0_i32, %c0_i32_0 : i32, i32
  }
  func.func @transform_10(%arg0: i32) -> (i32, i32) {
    %c0_i32 = arith.constant 0 : i32
    %c0_i32_0 = arith.constant 0 : i32
    %c0_i32_1 = arith.constant 0 : i32
    return %c0_i32, %c0_i32_0 : i32, i32
  }
  func.func @transform_11(%arg0: i32) -> (i32, i32) {
    %c0_i32 = arith.constant 0 : i32
    %c0_i32_0 = arith.constant 0 : i32
    %c0_i32_1 = arith.constant 0 : i32
    return %c0_i32, %c0_i32_0 : i32, i32
  }
  func.func @transform_12(%arg0: i32) -> (i32, i32, i32) {
    %c0_i32 = arith.constant 0 : i32
    %c0_i32_0 = arith.constant 0 : i32
    %c0_i32_1 = arith.constant 0 : i32
    return %arg0, %c0_i32, %c0_i32_0 : i32, i32, i32
  }
}

</mosaic_0001>

<bundles_post_ra>
// kernel: bert_layer_forward.3
= control target key start
LH: loop header
LB: loop body
LE: loop exit
PB: predicated region body
PF: predicated region fallthrough
CT: control target
= control target key end

     0   :  { %vm44_vm0 = vcmask 261120   ;;  %s575_s0 = inlined_call_operand.vmem [shape: f32[16,32], index: 0, kind: input, shape index: {}]   ;;  %s576_s1 = inlined_call_operand.vmem [shape: f32[64,32], index: 1, kind: input, shape index: {}]   ;;  %s577_s2 = inlined_call_operand.vmem [shape: f32[1,64], index: 2, kind: input, shape index: {}]   ;;  %s578_s3 = inlined_call_operand.vmem [shape: f32[32,64], index: 3, kind: input, shape index: {}]   ;;  %s579_s4 = inlined_call_operand.vmem [shape: f32[1,32], index: 4, kind: input, shape index: {}]   ;;  %s580_s5 = inlined_call_operand.vmem [shape: f32[1,32], index: 5, kind: input, shape index: {}]   ;;  %s581_s6 = inlined_call_operand.vmem [shape: f32[1,32], index: 6, kind: input, shape index: {}]   ;;  %s582_s7 = inlined_call_operand.hbm [shape: f32[16,32], index: 7, kind: output, shape index: {}]  }
   0x1   :  { %v36_v0 = vld [vmem:[%s576_s1 + $0x38] sm:$0xff]  ;;  %v35_v1 = vld [vmem:[%s576_s1 + $0x30] sm:$0xff]  ;;  %v491_v2 = vld [vmem:[%s575_s0] sm:$0xff] }
   0x2   :  { %374 = vmatprep.subr.msk.mxu0 %vm44_vm0, %v36_v0  ;;  %390 = vmatprep.mubr.msk.f32.mxu0 %vm44_vm0, %v491_v2 }
   0x3   :  { %375 = vmatpush3.xpose.msk.msra.mxu0 %vm44_vm0, %v36_v0 }
   0x4   :  { %376 = vmatprep.subr.msk.mxu0 %vm44_vm0, %v35_v1 }
   0x5   :  { %12 = vsyncpa [#allocation3], 0  ;;  %v34_v3 = vld [vmem:[%s576_s1 + $0x28] sm:$0xff]  ;;  %v33_v4 = vld [vmem:[%s576_s1 + $0x20] sm:$0xff]  ;;  %vm179_vm1 = vcmask 523264   ;;  %s437_s9 = smov [#allocation2]  }
   0x6   :  { %v32_v5 = vld [vmem:[%s576_s1 + $0x18] sm:$0xff]  ;;  %v31_v6 = vld [vmem:[%s576_s1 + $0x10] sm:$0xff]  ;;  %v30_v7 = vld [vmem:[%s576_s1 + $0x8] sm:$0xff]  ;;  %s327_s10 = sshll.u32 %s437_s9, 4  ;;  %s328_s10 = int_to_ptr.vmem [resolvable:$true] %s327_s10 }
   0x7   :  { %377 = vmatpush3.xpose.msk.msra.mxu0 %vm44_vm0, %v35_v1  ;;  %v29_v8 = vld [vmem:[%s576_s1] sm:$0xff]  ;;  %v28_v9 = vld [vmem:[%s575_s0 + $0x8] sm:$0xff]  ;;  %v171_v10 = vld [vmem:[%s578_s3 + $0x18] sm:$0xff]  ;;  %s415_s11 = scalar_lea.vmem %s328_s10, 256  ;;  %p420_p1 = scmp.lt.s32.totalorder %s328_s10, %s328_s10 }
   0x8   :  { %378 = vmatprep.subr.msk.mxu0 %vm44_vm0, %v34_v3  ;;  %v170_v11 = vld [vmem:[%s578_s3 + $0x10] sm:$0xff]  ;;  %393 = vmatprep.subr.msk.mxu1 %vm179_vm1, %v171_v10  ;;  %v169_v12 = vld [vmem:[%s578_s3 + $0x8] sm:$0xff]  ;;  %v168_v13 = vld [vmem:[%s578_s3] sm:$0xff]  ;;  %p416_p0 = scmp.ne.s32.totalorder %s328_s10, %s415_s11  ;;  %p421_p2 = scmp.lt.s32.totalorder %s415_s11, %s415_s11 }
   0x9   :  { %394 = vmatpush3.xpose.msk.msra.mxu1 %vm179_vm1, %v171_v10  ;;  %v338_v14 = vld [vmem:[%s577_s2] ss:$0 sm:$0xff] }
   0xa   :  { %395 = vmatprep.subr.msk.mxu1 %vm179_vm1, %v170_v11  ;;  %v349_v38 = vld [vmem:[%s579_s4] ss:$0 sm:$0xff]  ;;  %p422_p3 = por %p421_p2, %p420_p1 }
   0xb   :  { %379 = vmatpush3.xpose.msk.msra.mxu0 %vm44_vm0, %v34_v3  ;;  %v356_v63 = vld [vmem:[%s580_s5] ss:$0 sm:$0xff] }
   0xc   :  { %380 = vmatprep.subr.msk.mxu0 %vm44_vm0, %v33_v4  ;;  %v357_v1 = vld [vmem:[%s581_s6] ss:$0 sm:$0xff]  ;;  %p423_p4 = pnand %p422_p3, %p416_p0 }
   0xd   :  { %396 = vmatpush3.xpose.msk.msra.mxu1 %vm179_vm1, %v170_v11 }
   0xe   :  { %397 = vmatprep.subr.msk.mxu1 %vm179_vm1, %v169_v12 }
   0xf   :  { %381 = vmatpush3.xpose.msk.msra.mxu0 %vm44_vm0, %v33_v4 }
  0x10   :  { %382 = vmatprep.subr.msk.mxu0 %vm44_vm0, %v32_v5 }
  0x11   :  { %398 = vmatpush3.xpose.msk.msra.mxu1 %vm179_vm1, %v169_v12 }
  0x12   :  { %399 = vmatprep.subr.msk.mxu1 %vm179_vm1, %v168_v13 }
  0x13   :  { %383 = vmatpush3.xpose.msk.msra.mxu0 %vm44_vm0, %v32_v5 }
  0x14   :  { %384 = vmatprep.subr.msk.mxu0 %vm44_vm0, %v31_v6 }
  0x15   :  { %400 = vmatpush3.xpose.msk.msra.mxu1 %vm179_vm1, %v168_v13 }
  0x17   :  { %385 = vmatpush3.xpose.msk.msra.mxu0 %vm44_vm0, %v31_v6 }
  0x18   :  { %386 = vmatprep.subr.msk.mxu0 %vm44_vm0, %v30_v7 }
  0x1b   :  { %387 = vmatpush3.xpose.msk.msra.mxu0 %vm44_vm0, %v30_v7 }
  0x1c   :  { %388 = vmatprep.subr.msk.mxu0 %vm44_vm0, %v29_v8 }
  0x1f   :  { %389 = vmatpush3.xpose.msk.msra.mxu0 %vm44_vm0, %v29_v8 }
  0x22   :  { %391 = vmatmul.mubr.msk.f32.vlgmr.msra.gmra.mxu0 %vm44_vm0, %v28_v9 }
  0xe2   :  { %v392_v15 = vpop.f32.mrf.mxu0 }
  0xe3   :  { %v147_v16 = vadd.f32 %v392_v15, %v338_v14 }
  0xe4   :  { %v141_v17 = vpop.f32.mrf.mxu0 }
  0xe5   :  { %v153_v18 = vmul.f32 0.044715, %v147_v16  ;;  %v142_v19 = vadd.f32 %v338_v14, %v141_v17  ;;  %v151_v34 = vmul.f32 0.5, %v147_v16 }
  0xe7   :  { %v155_v20 = vmul.f32 %v153_v18, %v147_v16  ;;  %v152_v21 = vmul.f32 0.044715, %v142_v19  ;;  %v150_v32 = vmul.f32 0.5, %v142_v19 }
  0xe9   :  { %v157_v22 = vmul.f32 %v155_v20, %v147_v16  ;;  %v154_v23 = vmul.f32 %v152_v21, %v142_v19 }
  0xeb   :  { %v159_v24 = vadd.f32 %v157_v22, %v147_v16  ;;  %v156_v25 = vmul.f32 %v154_v23, %v142_v19 }
  0xed   :  { %v158_v26 = vadd.f32 %v156_v25, %v142_v19  ;;  %v161_v27 = vmul.f32 0.7978846, %v159_v24 }
  0xef   :  { %v160_v28 = vmul.f32 0.7978846, %v158_v26  ;;  %407 = vtanh.f32 %v161_v27 }
  0xf1   :  { %409 = vtanh.f32 %v160_v28 }
  0xfc   :  { %v408_v29 = vpop.eup %407 }
  0xfd   :  { %v165_v31 = vadd.f32 1.0, %v408_v29 }
  0xfe   :  { %v410_v30 = vpop.eup %409 }
  0xff   :  { %v164_v33 = vadd.f32 1.0, %v410_v30  ;;  %v167_v36 = vmul.f32 %v165_v31, %v151_v34 }
 0x101   :  { %v166_v35 = vmul.f32 %v164_v33, %v150_v32 }
 0x103   :  { %401 = vmatprep.mubr.msk.f32.mxu1 %vm179_vm1, %v166_v35 }
 0x104   :  { %402 = vmatmul.mubr.msk.f32.vlgmr.msra.gmra.mxu1 %vm179_vm1, %v167_v36 }
 0x1c4   :  { %v403_v37 = vpop.f32.mrf.mxu1 }
 0x1c5   :  { %v270_v40 = vadd.f32 %v403_v37, %v349_v38 }
 0x1c6   :  { %v264_v39 = vpop.f32.mrf.mxu1 }
 0x1c7   :  { %v265_v41 = vadd.f32 %v349_v38, %v264_v39  ;;  %v274_v44 = vadd.f32 %v270_v40, %v28_v9 }
 0x1c9   :  { %v273_v42 = vadd.f32 %v265_v41, %v491_v2  ;;  %v280_v45 = vsel %vm44_vm0, %v274_v44, 0.0 }
 0x1cb   :  { %v277_v43 = vsel %vm44_vm0, %v273_v42, 0.0 }
 0x1cc   :  { %278 = vadd.xlane.f32.xlu0 %v277_v43 }
 0x1d0   :  { %281 = vadd.xlane.f32.xlu0 %v280_v45 }
 0x255   :  { %v279_v46 = vpop.xlane.xlu0 %278 }
 0x256   :  { %v284_v47 = vmul.f32 0.03125, %v279_v46 }
 0x258   :  { %v286_v48 = vsub.f32 %v273_v42, %v284_v47 }
 0x259   :  { %v282_v49 = vpop.xlane.xlu0 %281 }
 0x25a   :  { %v285_v50 = vmul.f32 0.03125, %v282_v49  ;;  %v288_v51 = vmul.f32 %v286_v48, %v286_v48 }
 0x25c   :  { %v287_v52 = vsub.f32 %v274_v44, %v285_v50  ;;  %v290_v53 = vsel %vm44_vm0, %v288_v51, 0.0 }
 0x25d   :  { %291 = vadd.xlane.f32.xlu1 %v290_v53 }
 0x25e   :  { %v289_v54 = vmul.f32 %v287_v52, %v287_v52 }
 0x260   :  { %v293_v55 = vsel %vm44_vm0, %v289_v54, 0.0 }
 0x261   :  { %294 = vadd.xlane.f32.xlu1 %v293_v55 }
 0x2e6   :  { %v292_v56 = vpop.xlane.xlu1 %291 }
 0x2e7   :  { %v296_v57 = vmul.f32 0.03125, %v292_v56 }
 0x2e9   :  { %v298_v58 = vadd.f32 1e-12, %v296_v57 }
 0x2ea   :  { %v295_v59 = vpop.xlane.xlu1 %294 }
 0x2eb   :  { %411 = vrsqrt.f32 %v298_v58  ;;  %v297_v60 = vmul.f32 0.03125, %v295_v59 }
 0x2ed   :  { %v299_v61 = vadd.f32 1e-12, %v297_v60 }
 0x2ef   :  { %413 = vrsqrt.f32 %v299_v61 }
 0x2f8   :  { %v412_v62 = vpop.eup %411 }
 0x2f9   :  { %v302_v0 = vmul.f32 %v412_v62, %v286_v48 }
 0x2fb   :  { %v310_v2 = vmul.f32 %v356_v63, %v302_v0 }
 0x2fc   :  { %v414_v3 = vpop.eup %413 }
 0x2fd   :  { %v303_v4 = vmul.f32 %v414_v3, %v287_v52  ;;  %v318_v5 = vadd.f32 %v357_v1, %v310_v2 }
 0x2ff   :  { %v311_v6 = vmul.f32 %v356_v63, %v303_v4  ;;  %320 = vst.msk [vmem:[#allocation2] sm:$0xff] %vm44_vm0, %v318_v5 }
 0x301   :  { %v319_v7 = vadd.f32 %v357_v1, %v311_v6 }
 0x303   :  { %321 = vst.msk [vmem:[#allocation2 + $0x8] sm:$0xff] %vm44_vm0, %v319_v7 }
 0x304   :  { %426 = shalt.err (!%p423_p4)
}
 0x305   :  { %s438_s5 = smov 128   ;;  %s439_s6 = smov 8  }
 0x306   :  { %333 = dma.vmem_to_hbm [thread:$0]  %s328_s10, 256, %s582_s7, [#allocation3], %s438_s5, %s438_s5, %s439_s6  }
 0x307   :  { %435 = dma.done.wait [#allocation3], 256  }
 0x308   :  { %436 = vsyncadd [#allocation3], 4294967040 }
 0x309   :  { %337 = vsyncpa [#allocation3], 1 }

// kernel: bert_layer_forward.2
= control target key start
LH: loop header
LB: loop body
LE: loop exit
PB: predicated region body
PF: predicated region fallthrough
CT: control target
= control target key end

     0   :  { %s2848_s0 = inlined_call_operand.hbm [shape: f32[2,8,32], index: 0, kind: input, shape index: {}]   ;;  %s2849_s1 = inlined_call_operand.hbm [shape: f32[32,32], index: 1, kind: input, shape index: {}]   ;;  %s2850_s2 = inlined_call_operand.vmem [shape: f32[1,32], index: 2, kind: input, shape index: {}]   ;;  %s2851_s3 = inlined_call_operand.hbm [shape: f32[32,32], index: 3, kind: input, shape index: {}]   ;;  %s2852_s4 = inlined_call_operand.hbm [shape: f32[1,32], index: 4, kind: input, shape index: {}]   ;;  %s2853_s5 = inlined_call_operand.hbm [shape: f32[32,32], index: 5, kind: input, shape index: {}]   ;;  %s2854_s6 = inlined_call_operand.hbm [shape: f32[1,32], index: 6, kind: input, shape index: {}]   ;;  %s2855_s7 = inlined_call_operand.hbm [shape: f32[2,1,8], index: 7, kind: input, shape index: {}]   ;;  %s2856_s8 = inlined_call_operand.vmem [shape: f32[32,32], index: 8, kind: input, shape index: {}]   ;;  %s2857_s9 = inlined_call_operand.hbm [shape: f32[1,32], index: 9, kind: input, shape index: {}]   ;;  %s2858_s10 = inlined_call_operand.vmem [shape: f32[1,32], index: 10, kind: input, shape index: {}]   ;;  %s2859_s11 = inlined_call_operand.vmem [shape: f32[1,32], index: 11, kind: input, shape index: {}]   ;;  %s2860_s12 = inlined_call_operand.vmem [shape: f32[2,8,32], index: 12, kind: output, shape index: {}]  }
   0x1   :  { %2872 = sst [smem:[#allocation22_spill]] %s2849_s1 }
   0x2   :  { %2873 = sst [smem:[#allocation23_spill]] %s2851_s3 }
   0x3   :  { %2874 = sst [smem:[#allocation24_spill]] %s2852_s4 }
   0x4   :  { %17 = vsyncpa [#allocation3], 0 }
   0x5   :  { %19 = vsyncpa [#allocation3 + $0x1], 0 }
   0x6   :  { %20 = vsyncpa [#allocation5], 0 }
   0x7   :  { %21 = vsyncpa [#allocation8], 0 }
   0x8   :  { %22 = vsyncpa [#allocation11], 0  ;;  %s2447_s21 = smov 0   ;;  %s2449_s22 = smov 0  }
   0x9   :  { %s2451_s23 = smov 0   ;;  %s2453_s24 = smov 0  }
   0xa LB: > { %s2364_s25 = smov [#allocation4]   ;;  %s2468_s27 = sadd.s32 4294967295, %s2362_s24   ;;  %s2362_s24 = sphi %s2453_s24, %s2901_s24   ;;  %s2358_s23 = sphi %s2451_s23, %s2905_s23   ;;  %s2354_s22 = sphi %s2449_s22, %s2904_s22   ;;  %s2350_s21 = sphi %s2447_s21, %s2903_s21  }
   0xb   : > { %s333_s26 = sshll.u32 %s2364_s25, 4  ;;  %p1782_p0 = scmp.ge.s32.totalorder %s2362_s24, 1  ;;  %s334_s26 = int_to_ptr.vmem [resolvable:$true] %s333_s26 }
   0xc   : > { %p2866_p1 = scmp.eq.s32.totalorder %s2468_s27, 0  ;;  %p321_p2 = scmp.lt.s32.totalorder %s2362_s24, 3 }
   0xd   : > { %s2365_s29 = smov [#allocation6]   ;;  %s2366_s14 = smov [#allocation7]  }
   0xe   : > { %p2473_p3 = pnand %p1782_p0, %p321_p2  ;;  %s349_s30 = sshll.u32 %s2365_s29, 4  ;;  %s2485_s30 = int_to_ptr.vmem [resolvable:$true] %s349_s30 }
   0xf   : > { %s363_s15 = sshll.u32 %s2366_s14, 4  ;;  %s2107_s17 = scalar_lea.vmem %s334_s26, 512  ;;  %s2487_s15 = int_to_ptr.vmem [resolvable:$true] %s363_s15 }
  0x10   : > { %s2875_s28 = scalar_select %p2473_p3, 1, 0 }
  0x11   : > { %p1991_p4 = pneg %p2473_p3  ;;  %p2108_p7 = scmp.ne.s32.totalorder %s334_s26, %s2107_s17 }
  0x12   : > { %p2115_p10 = scmp.lt.s32.totalorder %s334_s26, %s334_s26  ;;  %p2116_p11 = scmp.lt.s32.totalorder %s2107_s17, %s2107_s17 }
  0x13   : > { %p2481_p5 = pnand %p1991_p4, %p2866_p1 }
  0x14   : > { %p2117_p12 = por %p2116_p11, %p2115_p10 }
  0x15   : > { %s2876_s13 = scalar_select %p2481_p5, 1, 0 }
  0x16   : > { %p2491_p6 = pneg %p2481_p5 }
  0x18   : > { %p2110_p8 = pnand %p2108_p7, %p2491_p6 }
  0x1a   : > { %p2111_p9 = pneg %p2110_p8 }
  0x1c   : > { %p2118_p13 = pnand %p2117_p12, %p2111_p9 }
  0x1e   : > { %2121 = shalt.err (!%p2118_p13)
}
  0x1f   : > { %s2861_s18 = smov 128   ;;  %s2862_s19 = smov 8  }
  0x20   : > { %s2878_s1 = sld [smem:[#allocation22_spill]]  ;;  %s2133_s29 = scalar_lea.vmem %s2485_s30, 512 }
  0x21   : > { %p2134_p0 = scmp.ne.s32.totalorder %s2485_s30, %s2133_s29  ;;  %p2141_p7 = scmp.lt.s32.totalorder %s2485_s30, %s2485_s30 }
  0x22   : > { %p2142_p8 = scmp.lt.s32.totalorder %s2133_s29, %s2133_s29 }
  0x23   : > { %p2136_p2 = pnand %p2134_p0, %p2491_p6 }
  0x24   : > { %p2143_p9 = por %p2142_p8, %p2141_p7 }
  0x25   : > { %p2137_p4 = pneg %p2136_p2 }
  0x26   : > { %1994 = dma.hbm_to_vmem [thread:$0]  (!%p2481_p5), %s2878_s1, 512, %s334_s26, [#allocation5], %s2861_s18, %s2861_s18, %s2862_s19  }
  0x27   : > { %p2144_p10 = pnand %p2143_p9, %p2137_p4 }
  0x29   : > { %2147 = shalt.err (!%p2144_p10)
}
  0x2a   : > { %s2879_s3 = sld [smem:[#allocation23_spill]]  ;;  %s2159_s26 = scalar_lea.vmem %s2487_s15, 16 }
  0x2b   : > { %p2160_p11 = scmp.ne.s32.totalorder %s2487_s15, %s2159_s26  ;;  %s2166_s20 = scalar_lea.vmem %s2487_s15, 32 }
  0x2c   : > { %p2167_p0 = scmp.lt.s32.totalorder %s2487_s15, %s2487_s15  ;;  %p2168_p2 = scmp.lt.s32.totalorder %s2166_s20, %s2159_s26 }
  0x2d   : > { %p2162_p12 = pnand %p2160_p11, %p2491_p6 }
  0x2e   : > { %p2169_p4 = por %p2168_p2, %p2167_p0 }
  0x2f   : > { %p2163_p13 = pneg %p2162_p12 }
  0x30   : > { %1997 = dma.hbm_to_vmem [thread:$0]  (!%p2481_p5), %s2879_s3, 512, %s2485_s30, [#allocation5], %s2861_s18, %s2861_s18, %s2862_s19  }
  0x31   : > { %p2170_p7 = pnand %p2169_p4, %p2163_p13 }
  0x33   : > { %2173 = shalt.err (!%p2170_p7)
}
  0x34   : > { %s2880_s4 = sld [smem:[#allocation24_spill]]  ;;  %s2534_s30 = sadd.s32 1, %s2362_s24  }
  0x35   : > { %2881 = sst [smem:[#allocation20_spill]] %s2534_s30  ;;  %s32_s14 = ssub.s32 %s2362_s24, %s2534_s30 }
  0x36   : > { %s35_s17 = sadd.s32 1, %s2358_s23  ;;  %p33_p8 = scmp.eq.s32.totalorder %s32_s14, 0 }
  0x37   : > { %p42_p9 = scmp.ne.s32.totalorder %s2358_s23, %s2354_s22  ;;  %p43_p10 = scmp.eq.s32.totalorder %s2362_s24, 0 }
  0x38   : > { %p48_p11 = scmp.ne.s32.totalorder %s2354_s22, %s2350_s21  ;;  %p2023_p0 = scmp.lt.s32.totalorder %s2362_s24, 2 }
  0x39   : > { %s2545_s26 = scalar_select %p33_p8, %s2358_s23, %s35_s17  }
  0x3a   : > { %2000 = dma.hbm_to_vmem [thread:$0]  (!%p2481_p5), %s2880_s4, 16, %s2487_s15, [#allocation8]  }
  0x3b   : > { %2882 = sst [smem:[#allocation21_spill]] %s2545_s26  ;;  %p44_p12 = por %p43_p10, %p42_p9 }
  0x3c   : > { %p2549_p13 = por %p2866_p1, %p48_p11  ;;  %s418_s25 = sand.u32 1, %s2362_s24  }
  0x3d   : > { %s2863_s15 = sand.u32 1, %s2358_s23   ;;  %s1791_s18 = sshll.u32 %s2362_s24, 7 }
  0x3e   : > { %s2883_s20 = scalar_select %p2549_p13, 1, 0 }
  0x3f   : > { %s1790_s29 = sshll.u32 %s2863_s15, 3  ;;  %s2562_s14 = scalar_lea.hbm %s2848_s0, %s1791_s18 }
  0x40   : > { %s422_s21 = scalar_lea.vmem [#allocation2], %s1790_s29  ;;  %p2564_p2 = pnand %p2023_p0, %p44_p12 }
  0x41   : > { %s429_s17 = sshll.u32 %s422_s21, 4  ;;  %s2369_s15 = smov [#allocation9]   ;;  %s2568_s17 = int_to_ptr.vmem [resolvable:$true] %s429_s17 }
  0x42   : > { %s373_s4 = sshll.u32 %s2369_s15, 4  ;;  %s2570_s26 = scalar_lea.sflag [#allocation3], %s418_s25  ;;  %s374_s4 = int_to_ptr.vmem [resolvable:$true] %s373_s4 }
  0x43   : > { %s2174_s1 = scalar_lea.hbm %s2562_s14, 128  ;;  %p2871_p7 = pneg %p2564_p2 }
  0x44   : > { %p2175_p4 = scmp.ne.s32.totalorder %s2562_s14, %s2174_s1  ;;  %s2179_s29 = scalar_lea.hbm %s2848_s0, 256 }
  0x45   : > { %p2180_p10 = scmp.lt.s32.totalorder %s2562_s14, %s2848_s0  ;;  %p2181_p11 = scmp.lt.s32.totalorder %s2179_s29, %s2174_s1 }
  0x46   : > { %p2177_p8 = pnand %p2871_p7, %p2175_p4 }
  0x47   : > { %p2182_p12 = por %p2181_p11, %p2180_p10 }
  0x48   : > { %p2178_p9 = pneg %p2177_p8 }
  0x4a   : > { %p2183_p0 = pnand %p2182_p12, %p2178_p9 }
  0x4c   : > { %2186 = shalt.err (!%p2183_p0)
}
  0x4d   : > { %s2187_s25 = scalar_lea.vmem %s2568_s17, 128  ;;  %s2370_s15 = smov [#allocation2]  }
  0x4e   : > { %p2188_p1 = scmp.ne.s32.totalorder %s2568_s17, %s2187_s25  ;;  %s2192_s18 = sshll.u32 %s2370_s15, 4  ;;  %s2193_s18 = int_to_ptr.vmem [resolvable:$false] %s2192_s18 }
  0x4f   : > { %s2194_s19 = scalar_lea.vmem %s2193_s18, 256  ;;  %p2195_p13 = scmp.lt.s32.totalorder %s2568_s17, %s2193_s18 }
  0x50   : > { %p2190_p4 = pnand %p2188_p1, %p2871_p7  ;;  %p2196_p3 = scmp.lt.s32.totalorder %s2194_s19, %s2187_s25 }
  0x52   : > { %p2191_p8 = pneg %p2190_p4  ;;  %p2197_p5 = por %p2196_p3, %p2195_p13 }
  0x54   : > { %p2198_p10 = pnand %p2197_p5, %p2191_p8 }
  0x56   : > { %2201 = shalt.err (!%p2198_p10)
}
  0x57   : > { %2013 = dma.hbm_to_vmem [thread:$0]  (!%p2564_p2), %s2562_s14, 128, %s2568_s17, %s2570_s26  }
  0x58   : > { %s2213_s30 = scalar_lea.vmem %s374_s4, 512  ;;  %p2221_p12 = scmp.lt.s32.totalorder %s374_s4, %s374_s4 }
  0x59   : > { %p2214_p1 = scmp.ne.s32.totalorder %s374_s4, %s2213_s30  ;;  %p2222_p0 = scmp.lt.s32.totalorder %s2213_s30, %s2213_s30 }
  0x5b   : > { %p2216_p9 = pnand %p2214_p1, %p2491_p6  ;;  %p2223_p4 = por %p2222_p0, %p2221_p12 }
  0x5d   : > { %p2217_p11 = pneg %p2216_p9 }
  0x5f   : > { %p2224_p7 = pnand %p2223_p4, %p2217_p11 }
  0x61   : > { %2227 = shalt.err (!%p2224_p7)
}
  0x62   : > { %p2885_p3 = scmp.ne.s32.totalorder %s2876_s13, 0  ;;  %s2886_s1 = smov 8  }
  0x63   : > { %s2887_s29 = smov 128   ;;  %s2371_s14 = smov [#allocation10]  }
  0x64   : > { %2003 = dma.hbm_to_vmem [thread:$0]  (!%p2885_p3), %s2853_s5, 512, %s374_s4, [#allocation8], %s2887_s29, %s2887_s29, %s2886_s1  }
  0x65   : > { %s387_s17 = sshll.u32 %s2371_s14, 4  ;;  %s2372_s15 = smov [#allocation13]   ;;  %s388_s17 = int_to_ptr.vmem [resolvable:$true] %s387_s17 }
  0x66   : > { %s401_s18 = sshll.u32 %s2372_s15, 4  ;;  %s2239_s19 = scalar_lea.vmem %s388_s17, 16  ;;  %s402_s18 = int_to_ptr.vmem [resolvable:$true] %s401_s18 }
  0x67   : > { %p2240_p5 = scmp.ne.s32.totalorder %s388_s17, %s2239_s19  ;;  %s2246_s30 = scalar_lea.vmem %s388_s17, 32 }
  0x68   : > { %p2247_p8 = scmp.lt.s32.totalorder %s388_s17, %s388_s17  ;;  %p2248_p10 = scmp.lt.s32.totalorder %s2246_s30, %s2239_s19 }
  0x69   : > { %p2242_p13 = pnand %p2240_p5, %p2491_p6 }
  0x6a   : > { %p2249_p1 = por %p2248_p10, %p2247_p8 }
  0x6b   : > { %p2243_p7 = pneg %p2242_p13 }
  0x6d   : > { %p2250_p9 = pnand %p2249_p1, %p2243_p7 }
  0x6f   : > { %2253 = shalt.err (!%p2250_p9)
}
  0x70   : > { %2006 = dma.hbm_to_vmem [thread:$0]  (!%p2885_p3), %s2854_s6, 16, %s388_s17, [#allocation11]  }
  0x71   : > { %s2265_s1 = scalar_lea.vmem %s402_s18, 16  ;;  %s2272_s29 = scalar_lea.vmem %s402_s18, 32 }
  0x72   : > { %p2266_p11 = scmp.ne.s32.totalorder %s402_s18, %s2265_s1  ;;  %p2273_p4 = scmp.lt.s32.totalorder %s402_s18, %s402_s18 }
  0x73   : > { %p2274_p5 = scmp.lt.s32.totalorder %s2272_s29, %s2265_s1 }
  0x74   : > { %p2268_p12 = pnand %p2266_p11, %p2491_p6 }
  0x75   : > { %p2275_p13 = por %p2274_p5, %p2273_p4 }
  0x76   : > { %p2269_p0 = pneg %p2268_p12 }
  0x78   : > { %p2276_p8 = pnand %p2275_p13, %p2269_p0 }
  0x7a   : > { %2279 = shalt.err (!%p2276_p8)
}
  0x7b   : > { %2009 = dma.hbm_to_vmem [thread:$0]  (!%p2885_p3), %s2857_s9, 16, %s402_s18, [#allocation5]  }
  0x7c   : > { %s1792_s17 = sshll.u32 %s2362_s24, 4  ;;  %s2888_s15 = sand.u32 1, %s2358_s23  }
  0x7d   : > { %s439_s16 = scalar_lea.vmem [#allocation12], %s2888_s15  ;;  %s444_s4 = scalar_lea.hbm %s2855_s7, %s1792_s17 }
  0x7e   : > { %s446_s19 = sshll.u32 %s439_s16, 4  ;;  %s2280_s1 = scalar_lea.hbm %s444_s4, 16  ;;  %s447_s19 = int_to_ptr.vmem [resolvable:$true] %s446_s19 }
  0x7f   : > { %p2281_p6 = scmp.ne.s32.totalorder %s444_s4, %s2280_s1  ;;  %p2889_p7 = pneg %p2564_p2 }
  0x80   : > { %s2285_s25 = scalar_lea.hbm %s2855_s7, 32  ;;  %p2286_p3 = scmp.lt.s32.totalorder %s444_s4, %s2855_s7 }
  0x81   : > { %p2283_p10 = pnand %p2281_p6, %p2889_p7  ;;  %p2287_p9 = scmp.lt.s32.totalorder %s2285_s25, %s2280_s1 }
  0x83   : > { %p2284_p1 = pneg %p2283_p10  ;;  %p2288_p11 = por %p2287_p9, %p2286_p3 }
  0x85   : > { %p2289_p12 = pnand %p2288_p11, %p2284_p1 }
  0x87   : > { %2292 = shalt.err (!%p2289_p12)
}
  0x88   : > { %s2293_s14 = scalar_lea.vmem %s447_s19, 16  ;;  %p2890_p4 = pmov %p2889_p7 }
  0x89   : > { %p2294_p0 = scmp.ne.s32.totalorder %s447_s19, %s2293_s14  ;;  %s2373_s17 = smov [#allocation12]  }
  0x8a   : > { %s2298_s15 = sshll.u32 %s2373_s17, 4  ;;  %s2299_s15 = int_to_ptr.vmem [resolvable:$false] %s2298_s15 }
  0x8b   : > { %p2296_p5 = pnand %p2294_p0, %p2890_p4  ;;  %s2300_s16 = scalar_lea.vmem %s2299_s15, 32 }
  0x8c   : > { %p2301_p8 = scmp.lt.s32.totalorder %s447_s19, %s2299_s15  ;;  %p2302_p6 = scmp.lt.s32.totalorder %s2300_s16, %s2293_s14 }
  0x8d   : > { %p2297_p13 = pneg %p2296_p5 }
  0x8e   : > { %p2303_p7 = por %p2302_p6, %p2301_p8 }
  0x90   : > { %p2304_p10 = pnand %p2303_p7, %p2297_p13 }
  0x92   : > { %2307 = shalt.err (!%p2304_p10)
}
  0x93   : > { %2016 = dma.hbm_to_vmem [thread:$0]  (!%p2564_p2), %s444_s4, 16, %s447_s19, %s2570_s26  }
  0x94   : > { %p2891_p1 = scmp.ne.s32.totalorder %s2875_s28, 0 }
  0x95   : > { %s457_s30 = sand.u32 (!%p2891_p1), 1, %s2468_s27   ;;  %s459_s21 = sand.u32 (!%p2891_p1), 1, %s2354_s22  }
  0x96   : > { %455 = sbr.rel (%p2891_p1) target bundleno = 3250 (0xcb2), region = 68  ;;  %s2646_s1 = sshll.u32 (!%p2891_p1), %s459_s21, 3 }
  0x97   : > { %s458_s13 = scalar_lea.sflag (!%p2891_p1), [#allocation3], %s457_s30  ;;  %s461_s29 = scalar_lea.vmem (!%p2891_p1), [#allocation2], %s2646_s1 }
  0x98   : > { %p2892_p3 = scmp.ne.s32.totalorder (!%p2891_p1), %s2883_s20, 0 }
  0x9b   : > { %2325 = dma.done.wait (%p2892_p3), %s458_s13, 128  }
  0x9c   : > { %2327 = vsyncadd (%p2892_p3), %s458_s13, 4294967168  ;;  %p2893_p2 = scmp.eq.s32.totalorder %s2468_s27, 0 }
  0x9e   : > { %2329 = dma.done.wait (%p2893_p2), [#allocation5], 1024   ;;  %p2894_p9 = pmov %p2893_p2 }
  0x9f   : > { %p2895_p11 = pmov %p2893_p2 }
  0xa0   : > { %2331 = vsyncadd (%p2894_p9), [#allocation5], 4294966272 }
  0xa1   : > { %2333 = dma.done.wait (%p2895_p11), [#allocation8], 528   ;;  %p2896_p12 = pmov %p2893_p2 }
  0xa2   : > { %p2897_p0 = pmov %p2893_p2 }
  0xa3   : > { %2335 = vsyncadd (%p2896_p12), [#allocation8], 4294966768 }
  0xa4   : > { %2337 = dma.done.wait (%p2897_p0), [#allocation11], 16   ;;  %p2898_p4 = pmov %p2897_p0 }
  0xa5   : > { %s2665_s3 = scalar_lea.vmem [#allocation12], %s459_s21 }
  0xa6   : > { %2339 = vsyncadd (%p2898_p4), [#allocation11], 4294967280 }
  0xa7   : > { %2341 = dma.done.wait (%p2892_p3), %s458_s13, 16  }
  0xa8   : > { %2343 = vsyncadd (%p2892_p3), %s458_s13, 4294967280  ;;  %p2899_p5 = pmov %p2897_p0 }
  0xa9   : > { %p2900_p13 = pmov %p2897_p0 }
  0xaa   : > { %2345 = dma.done.wait (%p2899_p5), [#allocation5], 16  }
  0xab   : > { %2347 = vsyncadd (%p2900_p13), [#allocation5], 4294967280  ;;  %v2374_v0 = vmov 0.0   ;;  %vm2375_vm0 = vmmov 0   ;;  %vm553_vm1 = vcmask 261120   ;;  %v642_v1 = vld [vmem:[#allocation6 + $0x18] sm:$0xff] }
  0xac   : > { %1890 = vmatprep.subr.mxu1 %v2374_v0  ;;  %1879 = vmatprep.subr.mxu0 %v2374_v0  ;;  %v545_v2 = vld [vmem:[#allocation4 + $0x18] sm:$0xff]  ;;  %v641_v3 = vld [vmem:[#allocation6 + $0x10] sm:$0xff]  ;;  %v640_v5 = vld [vmem:[#allocation6 + $0x8] sm:$0xff]  ;;  %vm826_vm2 = vcmask 64512   ;;  %s2376_s20 = smov 120   ;;  %s2377_s19 = smov 112  }
  0xad   : > { %1898 = vmatprep.mubr.msk.f32.mxu1 %vm2375_vm0, %v2374_v0  ;;  %1887 = vmatprep.mubr.msk.f32.mxu0 %vm2375_vm0, %v2374_v0  ;;  %v544_v4 = vld [vmem:[#allocation4 + $0x10] sm:$0xff]  ;;  %v543_v6 = vld [vmem:[#allocation4 + $0x8] sm:$0xff]  ;;  %v639_v7 = vld [vmem:[#allocation6] sm:$0xff]  ;;  %s2378_s4 = smov 104   ;;  %s2379_s25 = smov 8   ;;  %vm1510_vm3 = vcmask 130048  }
  0xae   : > { %1891 = vmatpush3.xpose.msk.msra.mxu1 %vm553_vm1, %v642_v1  ;;  %1880 = vmatpush3.xpose.msk.msra.mxu0 %vm553_vm1, %v545_v2  ;;  %v542_v8 = vld [vmem:[#allocation4] sm:$0xff]  ;;  %v2697_v9 = vld [vmem:[%s461_s29] sm:$0xff]  ;;  %s2380_s18 = smov 16   ;;  %s2381_s13 = smov 24   ;;  %vm1512_vm4 = vcmask 195584  }
  0xaf   : > { %1892 = vmatprep.subr.mxu1 %v2374_v0  ;;  %1881 = vmatprep.subr.mxu0 %v2374_v0  ;;  %v1808_v10 = vld [vmem:[#allocation7] ss:$0 sm:$0xff]  ;;  %v1802_v11 = vld [vmem:[%s2850_s2] ss:$0 sm:$0xff]  ;;  %v734_v19 = vld [vmem:[#allocation9 + $0x10] sm:$0xff]  ;;  %p537_p8 = scmp.lt.s32.totalorder %s2468_s27, 1 }
  0xb0   : > { %v735_v18 = vld [vmem:[#allocation9 + $0x18] sm:$0xff]  ;;  %v733_v20 = vld [vmem:[#allocation9 + $0x8] sm:$0xff]  ;;  %v732_v21 = vld [vmem:[#allocation9] sm:$0xff] }
  0xb1   : > { %v2740_v23 = vld [vmem:[%s2665_s3] ss:$0 sm:$0xff]  ;;  %v1814_v33 = vld [vmem:[#allocation10] ss:$0 sm:$0xff]  ;;  %s2907_s27 = smov (!%p537_p8, %s2468_s27), 1 }
  0xb2   : > { %1893 = vmatpush3.xpose.msk.msra.mxu1 %vm553_vm1, %v641_v3  ;;  %1882 = vmatpush3.xpose.msk.msra.mxu0 %vm553_vm1, %v544_v4  ;;  %s1801_s28 = sshll.u32 %s2907_s27, 3 }
  0xb3   : > { %1894 = vmatprep.subr.mxu1 %v2374_v0  ;;  %1883 = vmatprep.subr.mxu0 %v2374_v0 }
  0xb6   : > { %1895 = vmatpush3.xpose.msk.msra.mxu1 %vm553_vm1, %v640_v5  ;;  %1884 = vmatpush3.xpose.msk.msra.mxu0 %vm553_vm1, %v543_v6 }
  0xb7   : > { %1896 = vmatprep.subr.mxu1 %v2374_v0  ;;  %1885 = vmatprep.subr.mxu0 %v2374_v0 }
  0xba   : > { %1897 = vmatpush3.xpose.msk.msra.mxu1 %vm553_vm1, %v639_v7  ;;  %1886 = vmatpush3.xpose.msk.msra.mxu0 %vm553_vm1, %v542_v8 }
  0xbb   : > { %1912 = vmatprep.subr.mxu1 %v2374_v0  ;;  %1901 = vmatprep.subr.mxu0 %v2374_v0 }
  0xbd   : > { %1899 = vmatmul.mubr.msk.f32.vlgmr.msra.gmra.mxu1 %vm553_vm1, %v2697_v9  ;;  %1888 = vmatmul.mubr.msk.f32.vlgmr.msra.gmra.mxu0 %vm553_vm1, %v2697_v9 }
  0xbe   : > { %1914 = vmatprep.mubr.msk.f32.mxu1 %vm2375_vm0, %v2374_v0  ;;  %1909 = vmatprep.mubr.msk.f32.mxu0 %vm2375_vm0, %v2374_v0 }
  0xbf   : > { %1902 = vmatpush3.xpose.msk.msra.mxu0 %vm553_vm1, %v735_v18 }
  0xc0   : > { %1903 = vmatprep.subr.mxu0 %v2374_v0 }
  0xc3   : > { %1904 = vmatpush3.xpose.msk.msra.mxu0 %vm553_vm1, %v734_v19 }
  0xc4   : > { %1905 = vmatprep.subr.mxu0 %v2374_v0 }
  0xc7   : > { %1906 = vmatpush3.xpose.msk.msra.mxu0 %vm553_vm1, %v733_v20 }
  0xc8   : > { %1907 = vmatprep.subr.mxu0 %v2374_v0 }
  0xcb   : > { %1908 = vmatpush3.xpose.msk.msra.mxu0 %vm553_vm1, %v732_v21 }
  0xcc   : > { %1952 = vmatprep.subr.mxu0 %v2374_v0 }
  0xce   : > { %1910 = vmatmul.mubr.msk.f32.vlgmr.msra.gmra.mxu0 %vm553_vm1, %v2697_v9 }
  0xcf   : > { %1960 = vmatprep.mubr.msk.f32.mxu0 %vm2375_vm0, %v2374_v0 }
 0x17d   : > { %v728_v12 = vpop.f32.mrf.mxu1  ;;  %v635_v13 = vpop.f32.mrf.mxu0 }
 0x17e   : > { %v2712_v14 = vadd.f32 %v1808_v10, %v728_v12  ;;  %v2714_v15 = vadd.f32 %v1802_v11, %v635_v13 }
 0x17f   : > { %v1900_v16 = vpop.f32.mrf.mxu1  ;;  %v1889_v17 = vpop.f32.mrf.mxu0 }
 0x180   : > { %997 = vrot.lane.b32.xlu1 %v2712_v14, %s2376_s20  ;;  %1913 = vmatpush3.xpose.msk.msra.mxu1 %vm826_vm2, %v2712_v14 }
 0x181   : > { %1917 = vmatprep.subr.mxu1 %v2374_v0 }
 0x183   : > { %1915 = vmatmul.mubr.msk.f32.vlgmr.msra.gmra.mxu1 %vm826_vm2, %v2714_v15 }
 0x184   : > { %995 = vrot.lane.b32.xlu1 %v2714_v15, %s2376_s20  ;;  %1919 = vmatprep.mubr.msk.f32.mxu1 %vm2375_vm0, %v2374_v0 }
 0x18e   : > { %v821_v34 = vpop.f32.mrf.mxu0 }
 0x18f   : > { %v2745_v35 = vadd.f32 %v1814_v33, %v821_v34  ;;  %v1516_v33 = vld [vmem:[%s2856_s8 + $0x10] sm:$0xff]  ;;  %v1515_v34 = vld [vmem:[%s2856_s8 + $0x8] sm:$0xff] }
 0x190   : > { %v1911_v36 = vpop.f32.mrf.mxu0 }
 0x191   : > { %1918 = vmatpush3.msra.mxu1 %v2745_v35 }
 0x192   : > { %1922 = vmatprep.subr.mxu1 %v2374_v0 }
 0x1f2   : > { %v998_v39 = vpop.permute.xlu1 %997 }
 0x1f6   : > { %v996_v41 = vpop.permute.xlu1 %995 }
 0x243   : > { %v899_v22 = vpop.f32.mrf.mxu1 }
 0x244   : > { %v903_v24 = vmul.f32 0.35355338, %v899_v22 }
 0x245   : > { %v1916_v25 = vpop.f32.mrf.mxu1 }
 0x246   : > { %v910_v26 = vadd.f32 %v2740_v23, %v903_v24 }
 0x248   : > { %v911_v27 = vsel %vm826_vm2, %v910_v26, -inf }
 0x249   : > { %912 = vmax.xlane.f32.xlu0 %v911_v27 }
 0x2d2   : > { %v913_v28 = vpop.xlane.xlu0 %912 }
 0x2d3   : > { %v914_v29 = vsub.f32 %v910_v26, %v913_v28 }
 0x2d5   : > { %v915_v30 = vmul.f32 1.442695, %v914_v29 }
 0x2d7   : > { %2078 = vpow2.f32 %v915_v30 }
 0x2e4   : > { %v2079_v31 = vpop.eup %2078 }
 0x2e5   : > { %v917_v32 = vsel %vm826_vm2, %v2079_v31, 0.0 }
 0x2e6   : > { %918 = vadd.xlane.f32.xlu0 %v917_v32  ;;  %v1517_v32 = vld [vmem:[%s2856_s8 + $0x18] sm:$0xff] }
 0x2e7   : > { %1953 = vmatpush3.xpose.msk.msra.mxu0 %vm553_vm1, %v1517_v32 }
 0x2e8   : > { %1954 = vmatprep.subr.mxu0 %v2374_v0 }
 0x2eb   : > { %1955 = vmatpush3.xpose.msk.msra.mxu0 %vm553_vm1, %v1516_v33 }
 0x2ec   : > { %1956 = vmatprep.subr.mxu0 %v2374_v0 }
 0x2ef   : > { %1957 = vmatpush3.xpose.msk.msra.mxu0 %vm553_vm1, %v1515_v34 }
 0x2f0   : > { %1958 = vmatprep.subr.mxu0 %v2374_v0 }
 0x36f   : > { %v919_v37 = vpop.xlane.xlu0 %918 }
 0x370   : > { %2080 = vrcp.f32 %v919_v37 }
 0x37d   : > { %v2081_v38 = vpop.eup %2080 }
 0x37e   : > { %v921_v40 = vmul.f32 %v2081_v38, %v2079_v31 }
 0x380   : > { %1920 = vmatmul.mubr.msk.f32.vlgmr.msra.gmra.mxu1 %vm826_vm2, %v921_v40 }
 0x381   : > { %1923 = vmatpush3.xpose.msk.msra.mxu1 %vm826_vm2, %v998_v39  ;;  %1924 = vmatprep.mubr.msk.f32.mxu1 %vm2375_vm0, %v2374_v0 }
 0x382   : > { %1927 = vmatprep.subr.mxu1 %v2374_v0 }
 0x384   : > { %1925 = vmatmul.mubr.msk.f32.vlgmr.msra.gmra.mxu1 %vm826_vm2, %v996_v41 }
 0x385   : > { %1929 = vmatprep.mubr.msk.f32.mxu1 %vm2375_vm0, %v2374_v0 }
 0x440   : > { %v2757_v42 = vpop.f32.mrf.mxu1 }
 0x442   : > { %v1921_v43 = vpop.f32.mrf.mxu1 }
 0x444   : > { %v1069_v44 = vpop.f32.mrf.mxu1 }
 0x445   : > { %v1073_v45 = vmul.f32 0.35355338, %v1069_v44  ;;  %v1833_v44 = vld [vmem:[#allocation13] ss:$0 sm:$0xff] }
 0x446   : > { %v1926_v46 = vpop.f32.mrf.mxu1 }
 0x447   : > { %v1074_v47 = vadd.f32 %v2740_v23, %v1073_v45 }
 0x449   : > { %v1075_v48 = vsel %vm826_vm2, %v1074_v47, -inf }
 0x44a   : > { %1076 = vmax.xlane.f32.xlu0 %v1075_v48 }
 0x460   : > { %1087 = vrot.lane.b32.xlu0 %v2745_v35, %s2376_s20 }
 0x464   : > { %1165 = vrot.lane.b32.xlu0 %v2712_v14, %s2377_s19 }
 0x468   : > { %1163 = vrot.lane.b32.xlu0 %v2714_v15, %s2377_s19 }
 0x4d3   : > { %v1077_v49 = vpop.xlane.xlu0 %1076 }
 0x4d4   : > { %v1078_v50 = vsub.f32 %v1074_v47, %v1077_v49 }
 0x4d6   : > { %v1079_v51 = vmul.f32 1.442695, %v1078_v50 }
 0x4d7   : > { %v1088_v52 = vpop.permute.xlu0 %1087 }
 0x4d8   : > { %2082 = vpow2.f32 %v1079_v51  ;;  %1928 = vmatpush3.msra.mxu1 %v1088_v52 }
 0x4d9   : > { %1932 = vmatprep.subr.mxu1 %v2374_v0 }
 0x4db   : > { %v1166_v57 = vpop.permute.xlu0 %1165 }
 0x4df   : > { %v1164_v59 = vpop.permute.xlu0 %1163 }
 0x4e5   : > { %v2083_v53 = vpop.eup %2082 }
 0x4e6   : > { %v1081_v54 = vsel %vm826_vm2, %v2083_v53, 0.0 }
 0x4e7   : > { %1082 = vadd.xlane.f32.xlu1 %v1081_v54 }
 0x4f8   : > { %1254 = vrot.lane.b32.xlu1 %v2745_v35, %s2377_s19 }
 0x4fc   : > { %1332 = vrot.lane.b32.xlu1 %v2712_v14, %s2378_s4 }
 0x570   : > { %v1083_v55 = vpop.xlane.xlu1 %1082 }
 0x571   : > { %2084 = vrcp.f32 %v1083_v55 }
 0x574   : > { %v1255_v60 = vpop.permute.xlu1 %1254 }
 0x578   : > { %v1333_v11 = vpop.permute.xlu1 %1332 }
 0x57e   : > { %v2085_v56 = vpop.eup %2084 }
 0x57f   : > { %v1085_v58 = vmul.f32 %v2085_v56, %v2083_v53 }
 0x581   : > { %1930 = vmatmul.mubr.msk.f32.vlgmr.msra.gmra.mxu1 %vm826_vm2, %v1085_v58 }
 0x582   : > { %1933 = vmatpush3.xpose.msk.msra.mxu1 %vm826_vm2, %v1166_v57  ;;  %1934 = vmatprep.mubr.msk.f32.mxu1 %vm2375_vm0, %v2374_v0 }
 0x583   : > { %1937 = vmatprep.subr.mxu1 %v2374_v0 }
 0x585   : > { %1935 = vmatmul.mubr.msk.f32.vlgmr.msra.gmra.mxu1 %vm826_vm2, %v1164_v59  ;;  %v1840_v59 = vld [vmem:[%s2859_s11] ss:$0 sm:$0xff] }
 0x586   : > { %1938 = vmatpush3.msra.mxu1 %v1255_v60  ;;  %1939 = vmatprep.mubr.msk.f32.mxu1 %vm2375_vm0, %v2374_v0 }
 0x587   : > { %1942 = vmatprep.subr.mxu1 %v2374_v0 }
 0x641   : > { %v1159_v61 = vpop.f32.mrf.mxu1 }
 0x643   : > { %v1931_v62 = vpop.f32.mrf.mxu1 }
 0x645   : > { %v1237_v63 = vpop.f32.mrf.mxu1 }
 0x646   : > { %v1241_v1 = vmul.f32 0.35355338, %v1237_v63 }
 0x647   : > { %v1936_v2 = vpop.f32.mrf.mxu1 }
 0x648   : > { %v1242_v3 = vadd.f32 %v2740_v23, %v1241_v1 }
 0x64a   : > { %v1243_v4 = vsel %vm826_vm2, %v1242_v3, -inf }
 0x64b   : > { %1244 = vmax.xlane.f32.xlu0 %v1243_v4 }
 0x6d4   : > { %v1245_v5 = vpop.xlane.xlu0 %1244 }
 0x6d5   : > { %v1246_v6 = vsub.f32 %v1242_v3, %v1245_v5 }
 0x6d7   : > { %v1247_v7 = vmul.f32 1.442695, %v1246_v6 }
 0x6d9   : > { %2086 = vpow2.f32 %v1247_v7 }
 0x6e6   : > { %v2087_v8 = vpop.eup %2086 }
 0x6e7   : > { %v1249_v10 = vsel %vm826_vm2, %v2087_v8, 0.0 }
 0x6e8   : > { %1250 = vadd.xlane.f32.xlu1 %v1249_v10 }
 0x6f9   : > { %1330 = vrot.lane.b32.xlu1 %v2714_v15, %s2378_s4 }
 0x771   : > { %v1251_v12 = vpop.xlane.xlu1 %1250 }
 0x772   : > { %2088 = vrcp.f32 %v1251_v12 }
 0x775   : > { %v1331_v16 = vpop.permute.xlu1 %1330 }
 0x77f   : > { %v2089_v13 = vpop.eup %2088 }
 0x780   : > { %v1253_v14 = vmul.f32 %v2089_v13, %v2087_v8 }
 0x782   : > { %1940 = vmatmul.mubr.msk.f32.vlgmr.msra.gmra.mxu1 %vm826_vm2, %v1253_v14 }
 0x783   : > { %1943 = vmatpush3.xpose.msk.msra.mxu1 %vm826_vm2, %v1333_v11  ;;  %1944 = vmatprep.mubr.msk.f32.mxu1 %vm2375_vm0, %v2374_v0 }
 0x784   : > { %1947 = vmatprep.subr.mxu1 %v2374_v0 }
 0x786   : > { %1945 = vmatmul.mubr.msk.f32.vlgmr.msra.gmra.mxu1 %vm826_vm2, %v1331_v16 }
 0x787   : > { %1949 = vmatprep.mubr.msk.f32.mxu1 %vm2375_vm0, %v2374_v0 }
 0x842   : > { %v1326_v15 = vpop.f32.mrf.mxu1 }
 0x844   : > { %v1941_v17 = vpop.f32.mrf.mxu1 }
 0x846   : > { %v1404_v18 = vpop.f32.mrf.mxu1 }
 0x847   : > { %v1408_v19 = vmul.f32 0.35355338, %v1404_v18 }
 0x848   : > { %v1946_v20 = vpop.f32.mrf.mxu1 }
 0x849   : > { %v1409_v21 = vadd.f32 %v2740_v23, %v1408_v19 }
 0x84b   : > { %v1410_v22 = vsel %vm826_vm2, %v1409_v21, -inf }
 0x84c   : > { %1411 = vmax.xlane.f32.xlu0 %v1410_v22 }
 0x862   : > { %1421 = vrot.lane.b32.xlu0 %v2745_v35, %s2378_s4  ;;  %v1514_v35 = vld [vmem:[%s2856_s8] sm:$0xff] }
 0x863   : > { %1959 = vmatpush3.xpose.msk.msra.mxu0 %vm553_vm1, %v1514_v35 }
 0x866   : > { %1498 = vrot.lane.b32.xlu0 %v1159_v61, %s2379_s25  ;;  %s540_s25 = scalar_lea.vmem %s2860_s12, %s1801_s28 }
 0x86a   : > { %1502 = vrot.lane.b32.xlu0 %v1326_v15, %s2380_s18 }
 0x8d5   : > { %v1412_v24 = vpop.xlane.xlu0 %1411 }
 0x8d6   : > { %v1413_v25 = vsub.f32 %v1409_v21, %v1412_v24 }
 0x8d8   : > { %v1414_v26 = vmul.f32 1.442695, %v1413_v25 }
 0x8d9   : > { %v1422_v27 = vpop.permute.xlu0 %1421 }
 0x8da   : > { %2090 = vpow2.f32 %v1414_v26  ;;  %1948 = vmatpush3.msra.mxu1 %v1422_v27 }
 0x8dd   : > { %v1499_v38 = vpop.permute.xlu0 %1498 }
 0x8de   : > { %v1509_v40 = vsel %vm826_vm2, %v2757_v42, %v1499_v38 }
 0x8e1   : > { %v1503_v39 = vpop.permute.xlu0 %1502 }
 0x8e2   : > { %v1511_v41 = vsel %vm1510_vm3, %v1509_v40, %v1503_v39 }
 0x8e7   : > { %v2091_v28 = vpop.eup %2090 }
 0x8e8   : > { %v1416_v29 = vsel %vm826_vm2, %v2091_v28, 0.0 }
 0x8e9   : > { %1417 = vadd.xlane.f32.xlu1 %v1416_v29 }
 0x972   : > { %v1418_v23 = vpop.xlane.xlu1 %1417 }
 0x973   : > { %2092 = vrcp.f32 %v1418_v23 }
 0x980   : > { %v2093_v30 = vpop.eup %2092 }
 0x981   : > { %v1420_v31 = vmul.f32 %v2093_v30, %v2091_v28 }
 0x983   : > { %1950 = vmatmul.mubr.msk.f32.vlgmr.msra.gmra.mxu1 %vm826_vm2, %v1420_v31 }
 0xa43   : > { %v1493_v36 = vpop.f32.mrf.mxu1 }
 0xa44   : > { %1506 = vrot.lane.b32.xlu0 %v1493_v36, %s2381_s13 }
 0xa45   : > { %v1951_v37 = vpop.f32.mrf.mxu1 }
 0xab6   : > { %v1507_v43 = vpop.permute.xlu0 %1506 }
 0xab7   : > { %v1513_v0 = vsel %vm1512_vm4, %v1511_v41, %v1507_v43 }
 0xab8   : > { %1961 = vmatmul.mubr.msk.f32.vlgmr.msra.gmra.mxu0 %vm553_vm1, %v1513_v0 }
 0xb78   : > { %v1606_v45 = vpop.f32.mrf.mxu0 }
 0xb79   : > { %v1607_v46 = vadd.f32 %v1833_v44, %v1606_v45 }
 0xb7a   : > { %v1962_v47 = vpop.f32.mrf.mxu0 }
 0xb7b   : > { %v1610_v48 = vadd.f32 %v1607_v46, %v2697_v9  ;;  %v1839_v9 = vld [vmem:[%s2858_s10] ss:$0 sm:$0xff] }
 0xb7d   : > { %v1613_v49 = vsel %vm553_vm1, %v1610_v48, 0.0 }
 0xb7e   : > { %1614 = vadd.xlane.f32.xlu1 %v1613_v49 }
 0xc07   : > { %v1615_v50 = vpop.xlane.xlu1 %1614 }
 0xc08   : > { %v1617_v51 = vmul.f32 0.03125, %v1615_v50 }
 0xc0a   : > { %v1618_v52 = vsub.f32 %v1610_v48, %v1617_v51 }
 0xc0c   : > { %v1619_v42 = vmul.f32 %v1618_v52, %v1618_v52 }
 0xc0e   : > { %v1620_v53 = vsel %vm553_vm1, %v1619_v42, 0.0 }
 0xc0f   : > { %1621 = vadd.xlane.f32.xlu0 %v1620_v53 }
 0xc98   : > { %v1622_v54 = vpop.xlane.xlu0 %1621 }
 0xc99   : > { %v1623_v55 = vmul.f32 0.03125, %v1622_v54 }
 0xc9b   : > { %v1624_v56 = vadd.f32 1e-12, %v1623_v55 }
 0xc9d   : > { %2094 = vrsqrt.f32 %v1624_v56 }
 0xcaa   : > { %v2095_v57 = vpop.eup %2094 }
 0xcab   : > { %v1626_v58 = vmul.f32 %v2095_v57, %v1618_v52 }
 0xcad   : > { %v1633_v60 = vmul.f32 %v1839_v9, %v1626_v58 }
 0xcaf   : > { %v1640_v61 = vadd.f32 %v1840_v59, %v1633_v60 }
 0xcb1   : > { %1641 = vst.msk [vmem:[%s540_s25] sm:$0xff] %vm553_vm1, %v1640_v61 }
 0xcb2 PF: > { %s2901_s24 = sld [smem:[#allocation20_spill]]  ;;  %s2903_s21 = smov %s2354_s22 }
 0xcb3   : > { %s2902_s18 = sld [smem:[#allocation21_spill]]  ;;  %s2904_s22 = smov %s2358_s23 }
 0xcb8   : > { %p25_p6 = scmp.ge.s32.totalorder %s2901_s24, 4  }
 0xcb9   : > { %s2905_s23 = smov %s2902_s18 }
 0xcba   :  { %27 = sbr.rel (!%p25_p6) target bundleno = 10 (0xa), region = 143 }
 0xcbf   :  { %1661 = vsyncpa [#allocation3], 1 }
 0xcc0   :  { %1663 = vsyncpa [#allocation3 + $0x1], 1 }
 0xcc1   :  { %1664 = vsyncpa [#allocation5], 1 }
 0xcc2   :  { %1665 = vsyncpa [#allocation8], 1 }
 0xcc3   :  { %1666 = vsyncpa [#allocation11], 1 }

</bundles_post_ra>
